<compile_context>
chip_gen: v5e
topology: v5e:2x2
jax: 0.10.0
libtpu: 0.0.40
codegen_flags: <defaults>
</compile_context>

<pallas_src>
import functools

import jax
import jax.numpy as jnp
from jax import lax
from jax.experimental import pallas as pl
from jax.experimental.pallas import tpu as pltpu

BN_EPS = 1e-5

# Conservative budgets so the fused (VMEM-resident z) path is safe on every generation
# (v7x has only 64 MiB physical VMEM; v5e/v6e have 128 MiB).
_Z_VMEM_BUDGET = 20 * 1024 * 1024       # max bytes of f32 z kept resident in VMEM
_FUSED_VMEM_LIMIT = 36 * 1024 * 1024
_TWO_PASS_VMEM_LIMIT = 32 * 1024 * 1024


def _round_up(x, m):
    return (x + m - 1) // m * m


def _plan(M, D, tm_max=1024):
    """Tiling / path decision shared by the kernel wrapper and the reference."""
    tm = min(tm_max, _round_up(M, 16))
    num_tiles = pl.cdiv(M, tm)
    fused = num_tiles * tm * D * 4 <= _Z_VMEM_BUDGET
    if not fused:
        # Two-pass path: keep >= 4 tiles so a megacore (v7x) always has work per core.
        tm = min(tm_max, _round_up(max(16, -(-M // 4)), 16))
        num_tiles = pl.cdiv(M, tm)
    return fused, tm, num_tiles


# --------------------- fused single-kernel path (z resident in VMEM) ---------------------

def _fused_kernel(x1_ref, x2_ref, w_ref, gamma_ref, beta_ref, o_ref,
                  z_vmem, s1_ref, s2_ref, *, tm, m_total, eps):
    p = pl.program_id(0)   # 0: matmul + product + partial stats, 1: normalize
    i = pl.program_id(1)   # row tile

    @pl.when(p == 0)
    def _pass0():
        @pl.when(i == 0)
        def _init():
            s1_ref[...] = jnp.zeros_like(s1_ref)
            s2_ref[...] = jnp.zeros_like(s2_ref)

        # bf16 MXU operands (cast in-kernel -> no extra HBM pass), f32 accumulation,
        # f32 elementwise product.
        z = jnp.dot(x1_ref[...].astype(jnp.bfloat16),
                    w_ref[...].astype(jnp.bfloat16),
                    preferred_element_type=jnp.float32) * x2_ref[...]
        z_vmem[i] = z                      # keep z on-chip for pass 1

        if m_total % tm != 0:
            # Mask tail rows (edge-block reads are unspecified) before the stat sums.
            rows = i * tm + lax.broadcasted_iota(jnp.int32, (tm, 1), 0)
            z = jnp.where(rows < m_total, z, 0.0)

        # Layout-preserving split of the row axis: (tm//8, 8, D) is a free view of the
        # native (8, 128) f32 tiling -> the reduce is pure vreg-aligned VPU adds.
        zr = z.reshape(tm // 8, 8, z.shape[-1])
        s1_ref[...] += jnp.sum(zr, axis=0)
        s2_ref[...] += jnp.sum(zr * zr, axis=0)

    @pl.when(p == 1)
    def _pass1():
        inv_m = 1.0 / m_total
        mean = jnp.sum(s1_ref[...], axis=0, keepdims=True) * inv_m            # (1, D)
        # NOTE: E[z^2] - mean^2 (biased var, torch train mode). Fine here because the
        # per-feature mean of z is small relative to its std for typical inputs.
        var = jnp.sum(s2_ref[...], axis=0, keepdims=True) * inv_m - mean * mean
        scale = gamma_ref[...] * lax.rsqrt(jnp.maximum(var, 0.0) + eps)
        shift = beta_ref[...] - mean * scale
        o_ref[...] = z_vmem[i] * scale + shift


def _bilinear_fused(x1f, x2f, W, gamma, beta, tm, num_tiles, M, D, eps):
    kernel = functools.partial(_fused_kernel, tm=tm, m_total=M, eps=eps)
    return pl.pallas_call(
        kernel,
        out_shape=jax.ShapeDtypeStruct((M, D), jnp.float32),
        grid=(2, num_tiles),
        in_specs=[
            pl.BlockSpec((tm, D), lambda p, i: (i * (1 - p), 0)),   # x1 (used in pass 0)
            pl.BlockSpec((tm, D), lambda p, i: (i * (1 - p), 0)),   # x2 (used in pass 0)
            pl.BlockSpec((D, D), lambda p, i: (0, 0)),              # W (resident)
            pl.BlockSpec((1, D), lambda p, i: (0, 0)),              # gamma
            pl.BlockSpec((1, D), lambda p, i: (0, 0)),              # beta
        ],
        out_specs=pl.BlockSpec((tm, D), lambda p, i: (i * p, 0)),   # written in pass 1
        scratch_shapes=[
            pltpu.VMEM((num_tiles, tm, D), jnp.float32),   # z kept on-chip
            pltpu.VMEM((8, D), jnp.float32),               # partial sum(z)
            pltpu.VMEM((8, D), jnp.float32),               # partial sum(z*z)
        ],
        compiler_params=pltpu.CompilerParams(
            # Pass axis is sequential and the tile axis accumulates into shared scratch,
            # so both must stay "arbitrary" (per-core scratch would corrupt the stats).
            dimension_semantics=("arbitrary", "arbitrary"),
            vmem_limit_bytes=_FUSED_VMEM_LIMIT),
    )(x1f, x2f, W, gamma, beta)


# --------------------------- two-pass fallback (large M) ---------------------------

def _stats_kernel(x1_ref, x2_ref, w_ref, z_ref, s1_ref, s2_ref, *, tm, m_total):
    z = jnp.dot(x1_ref[...].astype(jnp.bfloat16),
                w_ref[...].astype(jnp.bfloat16),
                preferred_element_type=jnp.float32) * x2_ref[...]
    z_ref[...] = z.astype(z_ref.dtype)          # bf16 carrier between the passes

    if m_total % tm != 0:
        rows = pl.program_id(0) * tm + lax.broadcasted_iota(jnp.int32, (tm, 1), 0)
        z = jnp.where(rows < m_total, z, 0.0)   # mask tail rows for the stats (f32)

    zr = z.reshape(tm // 8, 8, z.shape[-1])     # layout-preserving split
    s1_ref[...] = jnp.sum(zr, axis=0)[None]
    s2_ref[...] = jnp.sum(zr * zr, axis=0)[None]


def _apply_kernel(z_ref, scale_ref, shift_ref, o_ref):
    o_ref[...] = z_ref[...].astype(jnp.float32) * scale_ref[...] + shift_ref[...]


def _bilinear_two_pass(x1f, x2f, W, gamma, beta, tm, num_tiles, M, D, eps):
    kernel = functools.partial(_stats_kernel, tm=tm, m_total=M)
    z, psum, psq = pl.pallas_call(
        kernel,
        out_shape=(
            jax.ShapeDtypeStruct((M, D), jnp.bfloat16),            # bf16 z carrier
            jax.ShapeDtypeStruct((num_tiles, 8, D), jnp.float32),
            jax.ShapeDtypeStruct((num_tiles, 8, D), jnp.float32),
        ),
        grid=(num_tiles,),
        in_specs=[
            pl.BlockSpec((tm, D), lambda i: (i, 0)),
            pl.BlockSpec((tm, D), lambda i: (i, 0)),
            pl.BlockSpec((D, D), lambda i: (0, 0)),
        ],
        out_specs=(
            pl.BlockSpec((tm, D), lambda i: (i, 0)),
            pl.BlockSpec((1, 8, D), lambda i: (i, 0, 0)),
            pl.BlockSpec((1, 8, D), lambda i: (i, 0, 0)),
        ),
        compiler_params=pltpu.CompilerParams(
            dimension_semantics=("parallel",),
            vmem_limit_bytes=_TWO_PASS_VMEM_LIMIT),
    )(x1f, x2f, W)

    # Finalize batch statistics (tiny) and fold the BN affine into scale/shift.
    inv_m = 1.0 / float(M)
    mean = (jnp.sum(psum, axis=(0, 1)) * inv_m).reshape(1, D)
    ex2 = (jnp.sum(psq, axis=(0, 1)) * inv_m).reshape(1, D)
    var = jnp.maximum(ex2 - mean * mean, 0.0)                 # biased var (torch train mode)
    scale = gamma * lax.rsqrt(var + eps)
    shift = beta - mean * scale

    out = pl.pallas_call(
        _apply_kernel,
        out_shape=jax.ShapeDtypeStruct((M, D), jnp.float32),
        grid=(num_tiles,),
        in_specs=[
            pl.BlockSpec((tm, D), lambda i: (i, 0)),
            pl.BlockSpec((1, D), lambda i: (0, 0)),
            pl.BlockSpec((1, D), lambda i: (0, 0)),
        ],
        out_specs=pl.BlockSpec((tm, D), lambda i: (i, 0)),
        compiler_params=pltpu.CompilerParams(
            dimension_semantics=("parallel",),
            vmem_limit_bytes=_TWO_PASS_VMEM_LIMIT),
    )(z, scale, shift)
    return out


# --------------------------- wrapper ---------------------------

def bilinear_interaction_pallas(x1, x2, W, gamma, beta, *, eps=BN_EPS, tm_max=1024):
    bs, S, D = x1.shape
    M = bs * S

    x1f = x1.reshape(M, D).astype(jnp.float32)
    x2f = x2.reshape(M, D).astype(jnp.float32)
    Wf = W.astype(jnp.float32)
    gamma2 = gamma.reshape(1, D).astype(jnp.float32)
    beta2 = beta.reshape(1, D).astype(jnp.float32)

    fused, tm, num_tiles = _plan(M, D, tm_max)
    if fused:
        out = _bilinear_fused(x1f, x2f, Wf, gamma2, beta2, tm, num_tiles, M, D, eps)
    else:
        out = _bilinear_two_pass(x1f, x2f, Wf, gamma2, beta2, tm, num_tiles, M, D, eps)
    return out.reshape(bs, S, D)


# --------------------------- pure-JAX reference ---------------------------

def bilinear_interaction_ref(x1, x2, W, gamma, beta, eps=BN_EPS, tm_max=1024):
    bs, S, D = x1.shape
    M = bs * S
    x1f = x1.reshape(M, D)
    x2f = x2.reshape(M, D)
    # Same numerics as the kernel: bf16 matmul operands, f32 accumulation.
    z = jnp.dot(x1f.astype(jnp.bfloat16), W.astype(jnp.bfloat16),
                preferred_element_type=jnp.float32) * x2f
    mean = jnp.mean(z, axis=0)
    var = jnp.mean(jnp.square(z - mean), axis=0)          # biased, like torch train mode
    fused, _, _ = _plan(M, D, tm_max)
    if not fused:
        # The large-M path carries z between passes in bf16; mirror that rounding.
        z = z.astype(jnp.bfloat16).astype(jnp.float32)
    out = (z - mean) * lax.rsqrt(var + eps) * gamma + beta
    return out.reshape(bs, S, D)


# --------------------------- demo / self-check ---------------------------

if __name__ == "__main__":
    batch, seq, d = 4, 128, 128   # D=128 keeps every block lane-dense

    root = jax.random.PRNGKey(0)
    k1, k2, kw = jax.random.split(root, 3)
    x1 = jax.random.normal(k1, (batch, seq, d), jnp.float32)
    x2 = jax.random.normal(k2, (batch, seq, d), jnp.float32)
    W = jax.random.normal(kw, (d, d), jnp.float32)        # nn.Parameter(torch.randn(D, D))
    gamma = jnp.ones((d,), jnp.float32)                   # BatchNorm1d defaults
    beta = jnp.zeros((d,), jnp.float32)

    out = jax.block_until_ready(bilinear_interaction_pallas(x1, x2, W, gamma, beta))
    ref = jax.block_until_ready(bilinear_interaction_ref(x1, x2, W, gamma, beta))

    assert out.shape == (batch, seq, d)
    assert jnp.all(jnp.isfinite(out))
    assert jnp.allclose(out, ref, atol=1e-3, rtol=1e-3), \
        f"max abs err {jnp.max(jnp.abs(out - ref))}"

    print("KERNEL_OK")
</pallas_src>

<mosaic_0001>
module attributes {stable_mosaic.version = 11 : i64} {
  func.func @_fused_kernel(%arg0: i32, %arg1: i32, %arg2: memref<512x128xf32, #tpu.memory_space<vmem>>, %arg3: memref<512x128xf32, #tpu.memory_space<vmem>>, %arg4: memref<128x128xf32, #tpu.memory_space<vmem>>, %arg5: memref<1x128xf32, #tpu.memory_space<vmem>>, %arg6: memref<1x128xf32, #tpu.memory_space<vmem>>, %arg7: memref<512x128xf32, #tpu.memory_space<vmem>>, %arg8: memref<1x512x128xf32, #tpu.memory_space<vmem>>, %arg9: memref<8x128xf32, #tpu.memory_space<vmem>>, %arg10: memref<8x128xf32, #tpu.memory_space<vmem>>) attributes {dimension_semantics = [#tpu.dimension_semantics<arbitrary>, #tpu.dimension_semantics<arbitrary>], iteration_bounds = array<i64: 2, 1>, scalar_prefetch = 0 : i64, scratch_operands = 3 : i64, tpu.core_type = #tpu.core_type<tc>, window_params = [{transform_indices = @transform_0, window_bounds = array<i64: 512, 128>}, {transform_indices = @transform_1, window_bounds = array<i64: 512, 128>}, {pipeline_mode = #tpu.pipeline_mode<synchronous>, transform_indices = @transform_2, window_bounds = array<i64: 128, 128>}, {pipeline_mode = #tpu.pipeline_mode<synchronous>, transform_indices = @transform_3, window_bounds = array<i64: 1, 128>}, {pipeline_mode = #tpu.pipeline_mode<synchronous>, transform_indices = @transform_4, window_bounds = array<i64: 1, 128>}, {transform_indices = @transform_5, window_bounds = array<i64: 512, 128>}]} {
    %c0_i32 = arith.constant 0 : i32
    %0 = arith.cmpi eq, %arg0, %c0_i32 : i32
    %1 = arith.extui %0 : i1 to i32
    %c0_i32_0 = arith.constant 0 : i32
    %2 = arith.cmpi ne, %1, %c0_i32_0 : i32
    scf.if %2 {
      %c0_i32_2 = arith.constant 0 : i32
      %6 = arith.cmpi eq, %arg1, %c0_i32_2 : i32
      %7 = arith.extui %6 : i1 to i32
      %c0_i32_3 = arith.constant 0 : i32
      %8 = arith.cmpi ne, %7, %c0_i32_3 : i32
      scf.if %8 {
        %cst_21 = arith.constant 0.000000e+00 : f32
        %30 = vector.broadcast %cst_21 : f32 to vector<8x128xf32>
        %c0_22 = arith.constant 0 : index
        %c0_23 = arith.constant 0 : index
        %31 = vector.load %arg9[%c0_22, %c0_23] : memref<8x128xf32, #tpu.memory_space<vmem>>, vector<8x128xf32>
        tpu.vector_store %arg9[%c0_22, %c0_23], %30 {strides = array<i32>} : memref<8x128xf32, #tpu.memory_space<vmem>>, vector<8x128xf32>,
        %cst_24 = arith.constant 0.000000e+00 : f32
        %32 = vector.broadcast %cst_24 : f32 to vector<8x128xf32>
        %c0_25 = arith.constant 0 : index
        %c0_26 = arith.constant 0 : index
        %33 = vector.load %arg10[%c0_25, %c0_26] : memref<8x128xf32, #tpu.memory_space<vmem>>, vector<8x128xf32>
        tpu.vector_store %arg10[%c0_25, %c0_26], %32 {strides = array<i32>} : memref<8x128xf32, #tpu.memory_space<vmem>>, vector<8x128xf32>,
      } else {
      }
      %c0 = arith.constant 0 : index
      %c0_4 = arith.constant 0 : index
      %9 = vector.load %arg2[%c0, %c0_4] : memref<512x128xf32, #tpu.memory_space<vmem>>, vector<512x128xf32>
      %10 = arith.truncf %9 : vector<512x128xf32> to vector<512x128xbf16>
      %c0_5 = arith.constant 0 : index
      %c0_6 = arith.constant 0 : index
      %11 = vector.load %arg4[%c0_5, %c0_6] : memref<128x128xf32, #tpu.memory_space<vmem>>, vector<128x128xf32>
      %12 = arith.truncf %11 : vector<128x128xf32> to vector<128x128xbf16>
      %cst = arith.constant dense<0.000000e+00> : vector<512x128xf32>
      %13 = tpu.matmul %10, %12, %cst {dimension_numbers = #tpu.dot_dimension_numbers<[1], [0], [0], [1], [0, 0, 1, 1], [], []>} : vector<512x128xbf16>, vector<128x128xbf16>, vector<512x128xf32> -> vector<512x128xf32>
      %c0_7 = arith.constant 0 : index
      %c0_8 = arith.constant 0 : index
      %14 = vector.load %arg3[%c0_7, %c0_8] : memref<512x128xf32, #tpu.memory_space<vmem>>, vector<512x128xf32>
      %15 = arith.mulf %13, %14 : vector<512x128xf32>
      %16 = arith.index_cast %arg1 : i32 to index
      %c0_9 = arith.constant 0 : index
      %c0_10 = arith.constant 0 : index
      %17 = vector.load %arg8[%16, %c0_9, %c0_10] : memref<1x512x128xf32, #tpu.memory_space<vmem>>, vector<1x512x128xf32>
      %18 = vector.shape_cast %17 : vector<1x512x128xf32> to vector<512x128xf32>
      %19 = vector.shape_cast %15 : vector<512x128xf32> to vector<1x512x128xf32>
      tpu.vector_store %arg8[%16, %c0_9, %c0_10], %19 {strides = array<i32>} : memref<1x512x128xf32, #tpu.memory_space<vmem>>, vector<1x512x128xf32>,
      %20 = vector.shape_cast %15 : vector<512x128xf32> to vector<64x8x128xf32>
      %c0_11 = arith.constant 0 : index
      %c0_12 = arith.constant 0 : index
      %21 = vector.load %arg9[%c0_11, %c0_12] : memref<8x128xf32, #tpu.memory_space<vmem>>, vector<8x128xf32>
      %cst_13 = arith.constant dense<0.000000e+00> : vector<8x128xf32>
      %22 = vector.multi_reduction <add>, %20, %cst_13 [0] : vector<64x8x128xf32> to vector<8x128xf32>
      %23 = arith.addf %21, %22 : vector<8x128xf32>
      %c0_14 = arith.constant 0 : index
      %c0_15 = arith.constant 0 : index
      %24 = vector.load %arg9[%c0_14, %c0_15] : memref<8x128xf32, #tpu.memory_space<vmem>>, vector<8x128xf32>
      tpu.vector_store %arg9[%c0_14, %c0_15], %23 {strides = array<i32>} : memref<8x128xf32, #tpu.memory_space<vmem>>, vector<8x128xf32>,
      %c0_16 = arith.constant 0 : index
      %c0_17 = arith.constant 0 : index
      %25 = vector.load %arg10[%c0_16, %c0_17] : memref<8x128xf32, #tpu.memory_space<vmem>>, vector<8x128xf32>
      %26 = arith.mulf %20, %20 : vector<64x8x128xf32>
      %cst_18 = arith.constant dense<0.000000e+00> : vector<8x128xf32>
      %27 = vector.multi_reduction <add>, %26, %cst_18 [0] : vector<64x8x128xf32> to vector<8x128xf32>
      %28 = arith.addf %25, %27 : vector<8x128xf32>
      %c0_19 = arith.constant 0 : index
      %c0_20 = arith.constant 0 : index
      %29 = vector.load %arg10[%c0_19, %c0_20] : memref<8x128xf32, #tpu.memory_space<vmem>>, vector<8x128xf32>
      tpu.vector_store %arg10[%c0_19, %c0_20], %28 {strides = array<i32>} : memref<8x128xf32, #tpu.memory_space<vmem>>, vector<8x128xf32>,
    } else {
    }
    %c1_i32 = arith.constant 1 : i32
    %3 = arith.cmpi eq, %arg0, %c1_i32 : i32
    %4 = arith.extui %3 : i1 to i32
    %c0_i32_1 = arith.constant 0 : i32
    %5 = arith.cmpi ne, %4, %c0_i32_1 : i32
    scf.if %5 {
      %c0 = arith.constant 0 : index
      %c0_2 = arith.constant 0 : index
      %6 = vector.load %arg9[%c0, %c0_2] : memref<8x128xf32, #tpu.memory_space<vmem>>, vector<8x128xf32>
      %cst = arith.constant dense<0.000000e+00> : vector<128xf32>
      %7 = vector.multi_reduction <add>, %6, %cst [0] : vector<8x128xf32> to vector<128xf32>
      %8 = vector.shape_cast %7 : vector<128xf32> to vector<1x128xf32>
      %cst_3 = arith.constant 0.001953125 : f32
      %9 = vector.broadcast %cst_3 : f32 to vector<1x128xf32>
      %10 = arith.mulf %8, %9 : vector<1x128xf32>
      %c0_4 = arith.constant 0 : index
      %c0_5 = arith.constant 0 : index
      %11 = vector.load %arg10[%c0_4, %c0_5] : memref<8x128xf32, #tpu.memory_space<vmem>>, vector<8x128xf32>
      %cst_6 = arith.constant dense<0.000000e+00> : vector<128xf32>
      %12 = vector.multi_reduction <add>, %11, %cst_6 [0] : vector<8x128xf32> to vector<128xf32>
      %13 = vector.shape_cast %12 : vector<128xf32> to vector<1x128xf32>
      %cst_7 = arith.constant 0.001953125 : f32
      %14 = vector.broadcast %cst_7 : f32 to vector<1x128xf32>
      %15 = arith.mulf %13, %14 : vector<1x128xf32>
      %16 = arith.mulf %10, %10 : vector<1x128xf32>
      %17 = arith.subf %15, %16 : vector<1x128xf32>
      %c0_8 = arith.constant 0 : index
      %c0_9 = arith.constant 0 : index
      %18 = vector.load %arg5[%c0_8, %c0_9] : memref<1x128xf32, #tpu.memory_space<vmem>>, vector<1x128xf32>
      %cst_10 = arith.constant 0.000000e+00 : f32
      %19 = vector.broadcast %cst_10 : f32 to vector<1x128xf32>
      %20 = arith.maximumf %17, %19 : vector<1x128xf32>
      %cst_11 = arith.constant 9.99999974E-6 : f32
      %21 = vector.broadcast %cst_11 : f32 to vector<1x128xf32>
      %22 = arith.addf %20, %21 : vector<1x128xf32>
      %23 = math.rsqrt %22 : vector<1x128xf32>
      %24 = arith.mulf %18, %23 : vector<1x128xf32>
      %c0_12 = arith.constant 0 : index
      %c0_13 = arith.constant 0 : index
      %25 = vector.load %arg6[%c0_12, %c0_13] : memref<1x128xf32, #tpu.memory_space<vmem>>, vector<1x128xf32>
      %26 = arith.mulf %10, %24 : vector<1x128xf32>
      %27 = arith.subf %25, %26 : vector<1x128xf32>
      %28 = arith.index_cast %arg1 : i32 to index
      %c0_14 = arith.constant 0 : index
      %c0_15 = arith.constant 0 : index
      %29 = vector.load %arg8[%28, %c0_14, %c0_15] : memref<1x512x128xf32, #tpu.memory_space<vmem>>, vector<1x512x128xf32>
      %30 = vector.shape_cast %29 : vector<1x512x128xf32> to vector<512x128xf32>
      %31 = vector.broadcast %24 : vector<1x128xf32> to vector<512x128xf32>
      %32 = arith.mulf %30, %31 : vector<512x128xf32>
      %33 = vector.broadcast %27 : vector<1x128xf32> to vector<512x128xf32>
      %34 = arith.addf %32, %33 : vector<512x128xf32>
      %c0_16 = arith.constant 0 : index
      %c0_17 = arith.constant 0 : index
      %35 = vector.load %arg7[%c0_16, %c0_17] : memref<512x128xf32, #tpu.memory_space<vmem>>, vector<512x128xf32>
      tpu.vector_store %arg7[%c0_16, %c0_17], %34 {strides = array<i32>} : memref<512x128xf32, #tpu.memory_space<vmem>>, vector<512x128xf32>,
    } else {
    }
    return
  }
  func.func @transform_0(%arg0: i32, %arg1: i32) -> (i32, i32) {
    %c1_i32 = arith.constant 1 : i32
    %0 = arith.subi %c1_i32, %arg0 : i32
    %1 = arith.muli %arg1, %0 : i32
    %c0_i32 = arith.constant 0 : i32
    %c0_i32_0 = arith.constant 0 : i32
    return %1, %c0_i32 : i32, i32
  }
  func.func @transform_1(%arg0: i32, %arg1: i32) -> (i32, i32) {
    %c1_i32 = arith.constant 1 : i32
    %0 = arith.subi %c1_i32, %arg0 : i32
    %1 = arith.muli %arg1, %0 : i32
    %c0_i32 = arith.constant 0 : i32
    %c0_i32_0 = arith.constant 0 : i32
    return %1, %c0_i32 : i32, i32
  }
  func.func @transform_2(%arg0: i32, %arg1: i32) -> (i32, i32) {
    %c0_i32 = arith.constant 0 : i32
    %c0_i32_0 = arith.constant 0 : i32
    %c0_i32_1 = arith.constant 0 : i32
    return %c0_i32, %c0_i32_0 : i32, i32
  }
  func.func @transform_3(%arg0: i32, %arg1: i32) -> (i32, i32) {
    %c0_i32 = arith.constant 0 : i32
    %c0_i32_0 = arith.constant 0 : i32
    %c0_i32_1 = arith.constant 0 : i32
    return %c0_i32, %c0_i32_0 : i32, i32
  }
  func.func @transform_4(%arg0: i32, %arg1: i32) -> (i32, i32) {
    %c0_i32 = arith.constant 0 : i32
    %c0_i32_0 = arith.constant 0 : i32
    %c0_i32_1 = arith.constant 0 : i32
    return %c0_i32, %c0_i32_0 : i32, i32
  }
  func.func @transform_5(%arg0: i32, %arg1: i32) -> (i32, i32) {
    %0 = arith.muli %arg1, %arg0 : i32
    %c0_i32 = arith.constant 0 : i32
    %c0_i32_0 = arith.constant 0 : i32
    return %0, %c0_i32 : i32, i32
  }
}

</mosaic_0001>

<bundles_post_ra>
// kernel: tpu_custom_call.1
= control target key start
LH: loop header
LB: loop body
LE: loop exit
PB: predicated region body
PF: predicated region fallthrough
CT: control target
= control target key end

     0   :  { %10 = vsyncpa [#allocation6], 0  ;;  %s2339_s0 = inlined_call_operand.hbm [shape: f32[512,128], index: 0, kind: input, shape index: {}]   ;;  %s2340_s1 = inlined_call_operand.hbm [shape: f32[512,128], index: 1, kind: input, shape index: {}]   ;;  %s2341_s2 = inlined_call_operand.hbm [shape: f32[128,128], index: 2, kind: input, shape index: {}]   ;;  %s2342_s3 = inlined_call_operand.vmem [shape: f32[1,128], index: 3, kind: input, shape index: {}]   ;;  %s2343_s4 = inlined_call_operand.vmem [shape: f32[1,128], index: 4, kind: input, shape index: {}]   ;;  %s2344_s5 = inlined_call_operand.hbm [shape: f32[512,128], index: 5, kind: output, shape index: {}]  }
   0x1   :  { %12 = vsyncpa [#allocation6 + $0x1], 0 }
   0x2   :  { %13 = vsyncpa [#allocation9], 0 }
   0x3   :  { %15 = vsyncpa [#allocation9 + $0x1], 0 }
   0x4   :  { %16 = vsyncpa [#allocation7], 0 }
   0x5   :  { %18 = vsyncpa [#allocation7 + $0x1], 0  ;;  %s1776_s18 = smov 0   ;;  %s1778_s19 = smov 0  }
   0x6   :  { %s1780_s20 = smov 0  }
   0x7 LB: > { %s1792_s21 = sadd.s32 4294967295, %s1736_s20   ;;  %s1464_s22 = sadd.s32 4294967294, %s1736_s20   ;;  %s1736_s20 = sphi %s1780_s20, %s24_s20   ;;  %s1732_s19 = sphi %s1778_s19, %s2347_s19   ;;  %s1728_s18 = sphi %s1776_s18, %s2346_s18  }
   0x8   : > { %s36_s23 = sadd.s32 1, %s1732_s19  ;;  %p1465_p0 = scmp.ge.s32.totalorder %s1736_s20, 1 }
   0x9   : > { %p38_p1 = scmp.ge.s32.totalorder %s36_s23, 2  ;;  %p192_p2 = scmp.lt.s32.totalorder %s1736_s20, 3 }
   0xa   : > { %p1535_p3 = scmp.eq.s32.totalorder %s1792_s21, 0  ;;  %s203_s27 = sshll.u32 %s2341_s2, 4  ;;  %s204_s27 = int_to_ptr.hbm [resolvable:$true] %s203_s27 }
   0xb   : > { %s2349_s23 = smov (%p38_p1, %s36_s23), 0  ;;  %p1801_p4 = pnand %p1465_p0, %p192_p2 }
   0xc   : > { %s1738_s28 = smov [#allocation10]   ;;  %p1467_p7 = scmp.ge.s32.totalorder %s1736_s20, 2 }
   0xd   : > { %p1520_p5 = pneg %p1801_p4  ;;  %s205_s29 = sshll.u32 %s1738_s28, 4  ;;  %s206_s29 = int_to_ptr.vmem [resolvable:$true] %s205_s29 }
   0xe   : > { %p1536_p8 = scmp.lt.s32.totalorder %s1736_s20, 2  ;;  %s1739_s30 = smov 128  }
   0xf   : > { %p1521_p6 = pnand %p1535_p3, %p1520_p5  ;;  %s1740_s6 = smov 8  }
  0x10   : > { %p1537_p9 = scmp.eq.s32.totalorder %s1736_s20, 0  ;;  %s237_s9 = sshll.u32 %s2339_s0, 4  ;;  %s238_s9 = int_to_ptr.hbm [resolvable:$true] %s237_s9 }
  0x11   : > { %1523 = dma.hbm_to_vmem [thread:$0]  (!%p1521_p6), %s204_s27, 2048, %s206_s29, [#allocation9], %s1739_s30, %s1739_s30, %s1740_s6  }
  0x12   : > { %s1741_s10 = smov [#allocation5]   ;;  %p1525_p10 = pnand %p1537_p9, %p1536_p8 }
  0x13   : > { %s239_s11 = sshll.u32 %s1741_s10, 4  ;;  %s249_s12 = sand.u32 1, %s1736_s20   ;;  %s240_s11 = int_to_ptr.vmem [resolvable:$true] %s239_s11 }
  0x14   : > { %1527 = dma.hbm_to_vmem [thread:$0]  (!%p1525_p10), %s238_s9, 8192, %s240_s11, [#allocation6], %s1739_s30, %s1739_s30, %s1740_s6  }
  0x15   : > { %s261_s15 = sshll.u32 %s2340_s1, 4  ;;  %s1742_s16 = smov [#allocation8]   ;;  %s262_s15 = int_to_ptr.hbm [resolvable:$true] %s261_s15 }
  0x16   : > { %s263_s17 = sshll.u32 %s1742_s16, 4  ;;  %s250_s25 = scalar_lea.sflag [#allocation9], %s249_s12  ;;  %s264_s17 = int_to_ptr.vmem [resolvable:$true] %s263_s17 }
  0x17   : > { %1530 = dma.hbm_to_vmem [thread:$0]  (!%p1525_p10), %s262_s15, 8192, %s264_s17, %s250_s25, %s1739_s30, %s1739_s30, %s1740_s6  }
  0x18   : > { %275 = sbr.rel (%p1801_p4) target bundleno = 551 (0x227), region = 40 }
  0x1d   : > { %1711 = dma.done.wait (%p1535_p3), [#allocation6], 8192  }
  0x1e   : > { %1713 = vsyncadd (%p1535_p3), [#allocation6], 4294959104  ;;  %s287_s26 = sand.u32 1, %s1792_s21  }
  0x1f   : > { %s288_s27 = scalar_lea.sflag [#allocation9], %s287_s26 }
  0x20   : > { %1715 = dma.done.wait (%p1535_p3), %s288_s27, 8192  }
  0x21   : > { %1717 = vsyncadd (%p1535_p3), %s288_s27, 4294959104 }
  0x22   : > { %1719 = dma.done.wait (%p1535_p3), [#allocation9], 2048  }
  0x23   : > { %1721 = vsyncadd (%p1535_p3), [#allocation9], 4294965248  ;;  %p1474_p11 = scmp.ne.s32.totalorder %s1728_s18, 0 }
  0x25   : > { %340 = sbr.rel (%p1474_p11) target bundleno = 425 (0x1a9), region = 56 }
  0x2a   : > { %v457_v0 = vld [vmem:[#allocation10 + $0x70] sm:$0xff]  ;;  %v458_v1 = vld [vmem:[#allocation10 + $0x78] sm:$0xff]  ;;  %v455_v2 = vld [vmem:[#allocation10 + $0x60] sm:$0xff] }
  0x2b   : > { %v466_v3 = vpack.c.bf16 %v458_v1, %v457_v0  ;;  %v456_v4 = vld [vmem:[#allocation10 + $0x68] sm:$0xff]  ;;  %v453_v6 = vld [vmem:[#allocation10 + $0x50] sm:$0xff]  ;;  %v454_v7 = vld [vmem:[#allocation10 + $0x58] sm:$0xff] }
  0x2c   : > { %v465_v5 = vpack.c.bf16 %v456_v4, %v455_v2  ;;  %v464_v8 = vpack.c.bf16 %v454_v7, %v453_v6  ;;  %v451_v9 = vld [vmem:[#allocation10 + $0x40] sm:$0xff]  ;;  %v452_v10 = vld [vmem:[#allocation10 + $0x48] sm:$0xff]  ;;  %v449_v12 = vld [vmem:[#allocation10 + $0x30] sm:$0xff] }
  0x2d   : > { %467 = vmatpush.bf16.msra.mxu0 %v466_v3  ;;  %1480 = vmatpush.bf16.msra.mxu1 %v466_v3  ;;  %v463_v11 = vpack.c.bf16 %v452_v10, %v451_v9  ;;  %v450_v13 = vld [vmem:[#allocation10 + $0x38] sm:$0xff]  ;;  %v447_v15 = vld [vmem:[#allocation10 + $0x20] sm:$0xff]  ;;  %v448_v16 = vld [vmem:[#allocation10 + $0x28] sm:$0xff] }
  0x2e   : > { %1481 = vmatpush.bf16.msra.mxu2 %v466_v3  ;;  %1482 = vmatpush.bf16.msra.mxu3 %v466_v3  ;;  %v462_v14 = vpack.c.bf16 %v450_v13, %v449_v12  ;;  %v461_v17 = vpack.c.bf16 %v448_v16, %v447_v15  ;;  %v445_v18 = vld [vmem:[#allocation10 + $0x10] sm:$0xff]  ;;  %v446_v19 = vld [vmem:[#allocation10 + $0x18] sm:$0xff]  ;;  %v443_v21 = vld [vmem:[#allocation10] sm:$0xff] }
  0x2f   : > { %v460_v20 = vpack.c.bf16 %v446_v19, %v445_v18  ;;  %v444_v22 = vld [vmem:[#allocation10 + $0x8] sm:$0xff]  ;;  %v347_v23 = vld [vmem:[#allocation5] sm:$0xff]  ;;  %v349_v30 = vld [vmem:[#allocation5 + $0x10] sm:$0xff] }
  0x30   : > { %v459_v24 = vpack.c.bf16 %v444_v22, %v443_v21  ;;  %v348_v25 = vld [vmem:[#allocation5 + $0x8] sm:$0xff]  ;;  %v363_v26 = vld [vmem:[#allocation5 + $0x80] sm:$0xff]  ;;  %v350_v31 = vld [vmem:[#allocation5 + $0x18] sm:$0xff] }
  0x31   : > { %468 = vmatpush.bf16.msra.mxu0 %v465_v5  ;;  %1483 = vmatpush.bf16.msra.mxu1 %v465_v5  ;;  %v364_v27 = vld [vmem:[#allocation5 + $0x88] sm:$0xff]  ;;  %v411_v28 = vpack.c.bf16 %v348_v25, %v347_v23  ;;  %v365_v32 = vld [vmem:[#allocation5 + $0x90] sm:$0xff]  ;;  %v366_v33 = vld [vmem:[#allocation5 + $0x98] sm:$0xff]  ;;  %v412_v34 = vpack.c.bf16 %v350_v31, %v349_v30 }
  0x32   : > { %1484 = vmatpush.bf16.msra.mxu2 %v465_v5  ;;  %1485 = vmatpush.bf16.msra.mxu3 %v465_v5  ;;  %v419_v29 = vpack.c.bf16 %v364_v27, %v363_v26  ;;  %v420_v35 = vpack.c.bf16 %v366_v33, %v365_v32  ;;  %v379_v36 = vld [vmem:[#allocation5 + $0x100] sm:$0xff]  ;;  %v380_v37 = vld [vmem:[#allocation5 + $0x108] sm:$0xff]  ;;  %v381_v45 = vld [vmem:[#allocation5 + $0x110] sm:$0xff] }
  0x33   : > { %v427_v38 = vpack.c.bf16 %v380_v37, %v379_v36  ;;  %v351_v39 = vld [vmem:[#allocation5 + $0x20] sm:$0xff]  ;;  %v352_v40 = vld [vmem:[#allocation5 + $0x28] sm:$0xff]  ;;  %v382_v46 = vld [vmem:[#allocation5 + $0x118] sm:$0xff] }
  0x34   : > { %v367_v41 = vld [vmem:[#allocation5 + $0xa0] sm:$0xff]  ;;  %v368_v42 = vld [vmem:[#allocation5 + $0xa8] sm:$0xff]  ;;  %v413_v43 = vpack.c.bf16 %v352_v40, %v351_v39  ;;  %v428_v47 = vpack.c.bf16 %v382_v46, %v381_v45  ;;  %v353_v48 = vld [vmem:[#allocation5 + $0x30] sm:$0xff] }
  0x35   : > { %469 = vmatpush.bf16.msra.mxu0 %v464_v8  ;;  %1486 = vmatpush.bf16.msra.mxu1 %v464_v8  ;;  %v421_v44 = vpack.c.bf16 %v368_v42, %v367_v41  ;;  %v354_v49 = vld [vmem:[#allocation5 + $0x38] sm:$0xff]  ;;  %v369_v50 = vld [vmem:[#allocation5 + $0xb0] sm:$0xff]  ;;  %v383_v54 = vld [vmem:[#allocation5 + $0x120] sm:$0xff] }
  0x36   : > { %1487 = vmatpush.bf16.msra.mxu2 %v464_v8  ;;  %1488 = vmatpush.bf16.msra.mxu3 %v464_v8  ;;  %v370_v51 = vld [vmem:[#allocation5 + $0xb8] sm:$0xff]  ;;  %v414_v52 = vpack.c.bf16 %v354_v49, %v353_v48  ;;  %v384_v55 = vld [vmem:[#allocation5 + $0x128] sm:$0xff]  ;;  %v395_v56 = vld [vmem:[#allocation5 + $0x180] sm:$0xff] }
  0x37   : > { %v422_v53 = vpack.c.bf16 %v370_v51, %v369_v50  ;;  %v429_v57 = vpack.c.bf16 %v384_v55, %v383_v54  ;;  %v396_v58 = vld [vmem:[#allocation5 + $0x188] sm:$0xff]  ;;  %v355_v60 = vld [vmem:[#allocation5 + $0x40] sm:$0xff]  ;;  %v385_v2 = vld [vmem:[#allocation5 + $0x130] sm:$0xff] }
  0x38   : > { %v435_v59 = vpack.c.bf16 %v396_v58, %v395_v56  ;;  %v356_v61 = vld [vmem:[#allocation5 + $0x48] sm:$0xff]  ;;  %v371_v62 = vld [vmem:[#allocation5 + $0xc0] sm:$0xff]  ;;  %v386_v3 = vld [vmem:[#allocation5 + $0x138] sm:$0xff] }
  0x39   : > { %470 = vmatpush.bf16.msra.mxu0 %v463_v11  ;;  %1489 = vmatpush.bf16.msra.mxu1 %v463_v11  ;;  %v372_v63 = vld [vmem:[#allocation5 + $0xc8] sm:$0xff]  ;;  %v415_v0 = vpack.c.bf16 %v356_v61, %v355_v60  ;;  %v397_v4 = vld [vmem:[#allocation5 + $0x190] sm:$0xff]  ;;  %v430_v5 = vpack.c.bf16 %v386_v3, %v385_v2  ;;  %v398_v6 = vld [vmem:[#allocation5 + $0x198] sm:$0xff] }
  0x3a   : > { %1490 = vmatpush.bf16.msra.mxu2 %v463_v11  ;;  %1491 = vmatpush.bf16.msra.mxu3 %v463_v11  ;;  %v423_v1 = vpack.c.bf16 %v372_v63, %v371_v62  ;;  %v436_v7 = vpack.c.bf16 %v398_v6, %v397_v4  ;;  %v357_v8 = vld [vmem:[#allocation5 + $0x50] sm:$0xff]  ;;  %v358_v9 = vld [vmem:[#allocation5 + $0x58] sm:$0xff]  ;;  %v388_v15 = vld [vmem:[#allocation5 + $0x148] sm:$0xff] }
  0x3b   : > { %v373_v10 = vld [vmem:[#allocation5 + $0xd0] sm:$0xff]  ;;  %v374_v11 = vld [vmem:[#allocation5 + $0xd8] sm:$0xff]  ;;  %v416_v12 = vpack.c.bf16 %v358_v9, %v357_v8  ;;  %v399_v16 = vld [vmem:[#allocation5 + $0x1a0] sm:$0xff] }
  0x3c   : > { %v424_v13 = vpack.c.bf16 %v374_v11, %v373_v10  ;;  %v400_v18 = vld [vmem:[#allocation5 + $0x1a8] sm:$0xff]  ;;  %v375_v22 = vld [vmem:[#allocation5 + $0xe0] sm:$0xff]  ;;  %v389_v26 = vld [vmem:[#allocation5 + $0x150] sm:$0xff] }
  0x3d   : > { %471 = vmatpush.bf16.msra.mxu0 %v462_v14  ;;  %1492 = vmatpush.bf16.msra.mxu1 %v462_v14  ;;  %v437_v19 = vpack.c.bf16 %v400_v18, %v399_v16  ;;  %v360_v21 = vld [vmem:[#allocation5 + $0x68] sm:$0xff]  ;;  %v390_v27 = vld [vmem:[#allocation5 + $0x158] sm:$0xff]  ;;  %v361_v32 = vld [vmem:[#allocation5 + $0x70] sm:$0xff] }
  0x3e   : > { %1493 = vmatpush.bf16.msra.mxu2 %v462_v14  ;;  %1494 = vmatpush.bf16.msra.mxu3 %v462_v14  ;;  %v387_v14 = vld [vmem:[#allocation5 + $0x140] sm:$0xff]  ;;  %v376_v23 = vld [vmem:[#allocation5 + $0xe8] sm:$0xff]  ;;  %v402_v30 = vld [vmem:[#allocation5 + $0x1b8] sm:$0xff] }
  0x3f   : > { %v425_v25 = vpack.c.bf16 %v376_v23, %v375_v22  ;;  %v362_v33 = vld [vmem:[#allocation5 + $0x78] sm:$0xff]  ;;  %v392_v39 = vld [vmem:[#allocation5 + $0x168] sm:$0xff]  ;;  %v403_v40 = vld [vmem:[#allocation5 + $0x1c0] sm:$0xff] }
  0x40   : > { %v418_v36 = vpack.c.bf16 %v362_v33, %v361_v32  ;;  %v404_v42 = vld [vmem:[#allocation5 + $0x1c8] sm:$0xff]  ;;  %v652_v45 = vld [vmem:[#allocation8 + $0x80] sm:$0xff]  ;;  %v393_v50 = vld [vmem:[#allocation5 + $0x170] sm:$0xff] }
  0x41   : > { %472 = vmatpush.bf16.msra.mxu0 %v461_v17  ;;  %1495 = vmatpush.bf16.msra.mxu1 %v461_v17  ;;  %v394_v51 = vld [vmem:[#allocation5 + $0x178] sm:$0xff]  ;;  %v637_v56 = vld [vmem:[#allocation8 + $0x8] sm:$0xff]  ;;  %v638_v2 = vld [vmem:[#allocation8 + $0x10] sm:$0xff] }
  0x42   : > { %1496 = vmatpush.bf16.msra.mxu2 %v461_v17  ;;  %1497 = vmatpush.bf16.msra.mxu3 %v461_v17  ;;  %v431_v17 = vpack.c.bf16 %v388_v15, %v387_v14  ;;  %v406_v54 = vld [vmem:[#allocation5 + $0x1d8] sm:$0xff]  ;;  %v654_v3 = vld [vmem:[#allocation8 + $0x90] sm:$0xff]  ;;  %v407_v8 = vld [vmem:[#allocation5 + $0x1e0] sm:$0xff] }
  0x43   : > { %v408_v9 = vld [vmem:[#allocation5 + $0x1e8] sm:$0xff]  ;;  %v639_v14 = vld [vmem:[#allocation8 + $0x18] sm:$0xff] }
  0x44   : > { %v655_v15 = vld [vmem:[#allocation8 + $0x98] sm:$0xff] }
  0x45   : > { %473 = vmatpush.bf16.msra.mxu0 %v460_v20  ;;  %1498 = vmatpush.bf16.msra.mxu1 %v460_v20 }
  0x46   : > { %1499 = vmatpush.bf16.msra.mxu2 %v460_v20  ;;  %1500 = vmatpush.bf16.msra.mxu3 %v460_v20  ;;  %v359_v20 = vld [vmem:[#allocation5 + $0x60] sm:$0xff] }
  0x49   : > { %474 = vmatpush.bf16.msra.mxu0 %v459_v24  ;;  %1501 = vmatpush.bf16.msra.mxu1 %v459_v24 }
  0x4a   : > { %1502 = vmatpush.bf16.msra.mxu2 %v459_v24  ;;  %1503 = vmatpush.bf16.msra.mxu3 %v459_v24  ;;  %v417_v24 = vpack.c.bf16 %v360_v21, %v359_v20 }
  0x4c   : > { %475 = vmatmul.bf16.vlgmr.msra.gmra.mxu0 %v411_v28  ;;  %515 = vmatmul.bf16.vlgmr.msra.gmra.mxu1 %v419_v29  ;;  %v401_v28 = vld [vmem:[#allocation5 + $0x1b0] sm:$0xff]  ;;  %v432_v29 = vpack.c.bf16 %v390_v27, %v389_v26  ;;  %v656_v26 = vld [vmem:[#allocation8 + $0xa0] sm:$0xff] }
  0x4d   : > { %555 = vmatmul.bf16.vlgmr.msra.gmra.mxu2 %v427_v38  ;;  %595 = vmatmul.bf16.vlgmr.msra.gmra.mxu3 %v435_v59  ;;  %v438_v31 = vpack.c.bf16 %v402_v30, %v401_v28  ;;  %v391_v38 = vld [vmem:[#allocation5 + $0x160] sm:$0xff]  ;;  %v669_v30 = vld [vmem:[#allocation8 + $0x108] sm:$0xff] }
  0x4e   : > { %v433_v41 = vpack.c.bf16 %v392_v39, %v391_v38 }
  0x5c   : > { %480 = vmatmul.bf16.gmra.mxu0 %v412_v34  ;;  %520 = vmatmul.bf16.gmra.mxu1 %v420_v35  ;;  %v377_v34 = vld [vmem:[#allocation5 + $0xf0] sm:$0xff]  ;;  %v378_v35 = vld [vmem:[#allocation5 + $0xf8] sm:$0xff] }
  0x5d   : > { %560 = vmatmul.bf16.gmra.mxu2 %v428_v47  ;;  %600 = vmatmul.bf16.gmra.mxu3 %v436_v7  ;;  %v426_v37 = vpack.c.bf16 %v378_v35, %v377_v34  ;;  %v409_v35 = vld [vmem:[#allocation5 + $0x1f0] sm:$0xff] }
  0x6c   : > { %485 = vmatmul.bf16.gmra.mxu0 %v413_v43  ;;  %525 = vmatmul.bf16.gmra.mxu1 %v421_v44  ;;  %v439_v43 = vpack.c.bf16 %v404_v42, %v403_v40  ;;  %v636_v44 = vld [vmem:[#allocation8] sm:$0xff]  ;;  %v657_v42 = vld [vmem:[#allocation8 + $0xa8] sm:$0xff] }
  0x6d   : > { %565 = vmatmul.bf16.gmra.mxu2 %v429_v57  ;;  %605 = vmatmul.bf16.gmra.mxu3 %v437_v19  ;;  %v653_v57 = vld [vmem:[#allocation8 + $0x88] sm:$0xff] }
  0x7c   : > { %490 = vmatmul.bf16.gmra.mxu0 %v414_v52  ;;  %530 = vmatmul.bf16.gmra.mxu1 %v422_v53  ;;  %v405_v52 = vld [vmem:[#allocation5 + $0x1d0] sm:$0xff]  ;;  %v434_v53 = vpack.c.bf16 %v394_v51, %v393_v50 }
  0x7d   : > { %570 = vmatmul.bf16.gmra.mxu2 %v430_v5  ;;  %610 = vmatmul.bf16.gmra.mxu3 %v438_v31  ;;  %v440_v55 = vpack.c.bf16 %v406_v54, %v405_v52  ;;  %v642_v50 = vld [vmem:[#allocation8 + $0x30] sm:$0xff] }
  0x7e   : > { %v658_v51 = vld [vmem:[#allocation8 + $0xb0] sm:$0xff] }
  0x8c   : > { %495 = vmatmul.bf16.gmra.mxu0 %v415_v0  ;;  %535 = vmatmul.bf16.gmra.mxu1 %v423_v1 }
  0x8d   : > { %575 = vmatmul.bf16.gmra.mxu2 %v431_v17  ;;  %615 = vmatmul.bf16.gmra.mxu3 %v439_v43 }
  0x9c   : > { %500 = vmatmul.bf16.gmra.mxu0 %v416_v12  ;;  %540 = vmatmul.bf16.gmra.mxu1 %v424_v13  ;;  %v441_v12 = vpack.c.bf16 %v408_v9, %v407_v8  ;;  %v644_v8 = vld [vmem:[#allocation8 + $0x40] sm:$0xff] }
  0x9d   : > { %580 = vmatmul.bf16.gmra.mxu2 %v432_v29  ;;  %620 = vmatmul.bf16.gmra.mxu3 %v440_v55  ;;  %v671_v55 = vld [vmem:[#allocation8 + $0x118] sm:$0xff]  ;;  %v660_v9 = vld [vmem:[#allocation8 + $0xc0] sm:$0xff] }
  0xac   : > { %505 = vmatmul.bf16.gmra.mxu0 %v417_v24  ;;  %545 = vmatmul.bf16.gmra.mxu1 %v425_v25  ;;  %v668_v24 = vld [vmem:[#allocation8 + $0x100] sm:$0xff] }
  0xad   : > { %585 = vmatmul.bf16.gmra.mxu2 %v433_v41  ;;  %625 = vmatmul.bf16.gmra.mxu3 %v441_v12  ;;  %v640_v25 = vld [vmem:[#allocation8 + $0x20] sm:$0xff]  ;;  %v641_v41 = vld [vmem:[#allocation8 + $0x28] sm:$0xff] }
  0xbc   : > { %510 = vmatmul.bf16.gmra.mxu0 %v418_v36  ;;  %550 = vmatmul.bf16.gmra.mxu1 %v426_v37  ;;  %v410_v36 = vld [vmem:[#allocation5 + $0x1f8] sm:$0xff] }
  0xbd   : > { %590 = vmatmul.bf16.gmra.mxu2 %v434_v53  ;;  %v442_v39 = vpack.c.bf16 %v410_v36, %v409_v35  ;;  %v686_v35 = vld [vmem:[#allocation8 + $0x190] sm:$0xff] }
  0xbe   : > { %v646_v36 = vld [vmem:[#allocation8 + $0x50] sm:$0xff] }
  0xbf   : > { %630 = vmatmul.bf16.gmra.mxu3 %v442_v39 }
  0xc9   : > { %v476_v46 = vpop.f32.mrf.mxu0  ;;  %v516_v47 = vpop.f32.mrf.mxu1 }
  0xca   : > { %v700_v48 = vmul.f32 %v636_v44, %v476_v46  ;;  %v1838_v49 = vmul.f32 %v652_v45, %v516_v47 }
  0xcc   : > { %766 = vst [vmem:[#allocation2 + $0xb0] sm:$0xff] %v700_v48  ;;  %v897_v62 = vmul.f32 %v700_v48, %v700_v48 }
  0xcd   : > { %782 = vst [vmem:[#allocation2 + $0xe0] sm:$0xff] %v1838_v49 }
  0xd0   : > { %v556_v20 = vpop.f32.mrf.mxu2 }
  0xd1   : > { %v478_v58 = vpop.f32.mrf.mxu0  ;;  %v518_v59 = vpop.f32.mrf.mxu1  ;;  %v1850_v27 = vmul.f32 %v668_v24, %v556_v20  ;;  %v685_v20 = vld [vmem:[#allocation8 + $0x188] sm:$0xff] }
  0xd2   : > { %v701_v60 = vmul.f32 %v637_v56, %v478_v58  ;;  %v1841_v61 = vmul.f32 %v653_v57, %v518_v59  ;;  %v661_v24 = vld [vmem:[#allocation8 + $0xc8] sm:$0xff] }
  0xd3   : > { %798 = vst [vmem:[#allocation2 + $0x148] sm:$0xff] %v1850_v27 }
  0xd4   : > { %767 = vst [vmem:[#allocation2 + $0x1b0] sm:$0xff] %v701_v60  ;;  %v831_v63 = vadd.f32 %v701_v60, %v700_v48  ;;  %v898_v0 = vmul.f32 %v701_v60, %v701_v60  ;;  %v670_v48 = vld [vmem:[#allocation8 + $0x110] sm:$0xff]  ;;  %v643_v60 = vld [vmem:[#allocation8 + $0x38] sm:$0xff] }
  0xd5   : > { %783 = vst [vmem:[#allocation2 + $0x188] sm:$0xff] %v1841_v61 }
  0xd6   : > { %v961_v1 = vadd.f32 %v898_v0, %v897_v62  ;;  %v659_v62 = vld [vmem:[#allocation8 + $0xb8] sm:$0xff] }
  0xd8   : > { %v558_v33 = vpop.f32.mrf.mxu2 }
  0xd9   : > { %v481_v4 = vpop.f32.mrf.mxu0  ;;  %v521_v5 = vpop.f32.mrf.mxu1  ;;  %v1855_v34 = vmul.f32 %v669_v30, %v558_v33  ;;  %v674_v33 = vld [vmem:[#allocation8 + $0x130] sm:$0xff] }
  0xda   : > { %v702_v6 = vmul.f32 %v638_v2, %v481_v4  ;;  %v1844_v7 = vmul.f32 %v654_v3, %v521_v5  ;;  %v596_v4 = vpop.f32.mrf.mxu3  ;;  %v672_v5 = vld [vmem:[#allocation8 + $0x120] sm:$0xff] }
  0xdb   : > { %799 = vst [vmem:[#allocation2 + $0x1d0] sm:$0xff] %v1855_v34 }
  0xdc   : > { %768 = vst [vmem:[#allocation2 + $0xd8] sm:$0xff] %v702_v6  ;;  %v832_v10 = vadd.f32 %v831_v63, %v702_v6  ;;  %v899_v11 = vmul.f32 %v702_v6, %v702_v6  ;;  %v684_v6 = vld [vmem:[#allocation8 + $0x180] sm:$0xff] }
  0xdd   : > { %784 = vst [vmem:[#allocation2 + $0x138] sm:$0xff] %v1844_v7 }
  0xde   : > { %v962_v13 = vadd.f32 %v961_v1, %v899_v11  ;;  %v1889_v11 = vmul.f32 %v684_v6, %v596_v4  ;;  %v648_v6 = vld [vmem:[#allocation8 + $0x60] sm:$0xff] }
  0xe0   : > { %v561_v47 = vpop.f32.mrf.mxu2  ;;  %814 = vst [vmem:[#allocation2 + $0xb8] sm:$0xff] %v1889_v11 }
  0xe1   : > { %v483_v16 = vpop.f32.mrf.mxu0  ;;  %v523_v17 = vpop.f32.mrf.mxu1  ;;  %v1869_v52 = vmul.f32 %v670_v48, %v561_v47 }
  0xe2   : > { %v703_v18 = vmul.f32 %v639_v14, %v483_v16  ;;  %v1847_v19 = vmul.f32 %v655_v15, %v523_v17  ;;  %v673_v14 = vld [vmem:[#allocation8 + $0x128] sm:$0xff] }
  0xe3   : > { %800 = vst [vmem:[#allocation2 + $0x100] sm:$0xff] %v1869_v52 }
  0xe4   : > { %769 = vst [vmem:[#allocation2 + $0x18] sm:$0xff] %v703_v18  ;;  %v833_v21 = vadd.f32 %v832_v10, %v703_v18  ;;  %v900_v22 = vmul.f32 %v703_v18, %v703_v18  ;;  %v598_v18 = vpop.f32.mrf.mxu3 }
  0xe5   : > { %785 = vst [vmem:[#allocation2 + $0x140] sm:$0xff] %v1847_v19 }
  0xe6   : > { %v963_v23 = vadd.f32 %v962_v13, %v900_v22  ;;  %v1899_v22 = vmul.f32 %v685_v20, %v598_v18 }
  0xe8   : > { %v563_v58 = vpop.f32.mrf.mxu2  ;;  %815 = vst [vmem:[#allocation2 + $0x88] sm:$0xff] %v1899_v22 }
  0xe9   : > { %v486_v28 = vpop.f32.mrf.mxu0  ;;  %v526_v29 = vpop.f32.mrf.mxu1  ;;  %v1876_v59 = vmul.f32 %v671_v55, %v563_v58  ;;  %v647_v58 = vld [vmem:[#allocation8 + $0x58] sm:$0xff] }
  0xea   : > { %v704_v31 = vmul.f32 %v640_v25, %v486_v28  ;;  %v1853_v32 = vmul.f32 %v656_v26, %v526_v29 }
  0xeb   : > { %801 = vst [vmem:[#allocation2 + $0xc8] sm:$0xff] %v1876_v59 }
  0xec   : > { %770 = vst [vmem:[#allocation2 + $0x50] sm:$0xff] %v704_v31  ;;  %v1857_v37 = vadd.f32 %v833_v21, %v704_v31  ;;  %v901_v38 = vmul.f32 %v704_v31, %v704_v31  ;;  %v601_v31 = vpop.f32.mrf.mxu3 }
  0xed   : > { %786 = vst [vmem:[#allocation2 + $0x80] sm:$0xff] %v1853_v32 }
  0xee   : > { %v1860_v40 = vadd.f32 %v963_v23, %v901_v38  ;;  %v645_v23 = vld [vmem:[#allocation8 + $0x48] sm:$0xff]  ;;  %v662_v38 = vld [vmem:[#allocation8 + $0xd0] sm:$0xff] }
  0xf0   : > { %v566_v3 = vpop.f32.mrf.mxu2 }
  0xf1   : > { %v488_v43 = vpop.f32.mrf.mxu0  ;;  %v528_v44 = vpop.f32.mrf.mxu1  ;;  %v1887_v10 = vmul.f32 %v672_v5, %v566_v3 }
  0xf2   : > { %v1863_v45 = vmul.f32 %v641_v41, %v488_v43  ;;  %v1865_v46 = vmul.f32 %v657_v42, %v528_v44  ;;  %v1913_v41 = vmul.f32 %v686_v35, %v601_v31  ;;  %v675_v44 = vld [vmem:[#allocation8 + $0x138] sm:$0xff] }
  0xf3   : > { %802 = vst [vmem:[#allocation2 + $0x40] sm:$0xff] %v1887_v10 }
  0xf4   : > { %771 = vst [vmem:[#allocation2 + $0x168] sm:$0xff] %v1863_v45 }
  0xf5   : > { %787 = vst [vmem:[#allocation2 + $0x1a8] sm:$0xff] %v1865_v46 }
  0xf6   : > { %816 = vst [vmem:[#allocation2 + $0xa8] sm:$0xff] %v1913_v41 }
  0xf8   : > { %v568_v17 = vpop.f32.mrf.mxu2 }
  0xf9   : > { %v491_v53 = vpop.f32.mrf.mxu0  ;;  %v531_v54 = vpop.f32.mrf.mxu1  ;;  %v1897_v21 = vmul.f32 %v673_v14, %v568_v17  ;;  %v688_v14 = vld [vmem:[#allocation8 + $0x1a0] sm:$0xff] }
  0xfa   : > { %v1872_v56 = vmul.f32 %v642_v50, %v491_v53  ;;  %v1874_v57 = vmul.f32 %v658_v51, %v531_v54  ;;  %v603_v51 = vpop.f32.mrf.mxu3  ;;  %v687_v53 = vld [vmem:[#allocation8 + $0x198] sm:$0xff] }
  0xfb   : > { %803 = vst [vmem:[#allocation2 + $0x1f8] sm:$0xff] %v1897_v21  ;;  %v1923_v55 = vmul.f32 %v687_v53, %v603_v51 }
  0xfc   : > { %772 = vst [vmem:[#allocation2 + $0x130] sm:$0xff] %v1872_v56 }
  0xfd   : > { %788 = vst [vmem:[#allocation2 + $0x1b8] sm:$0xff] %v1874_v57 }
  0xfe   : > { %817 = vst [vmem:[#allocation2 + $0x1c8] sm:$0xff] %v1923_v55 }
 0x100   : > { %v571_v30 = vpop.f32.mrf.mxu2 }
 0x101   : > { %v493_v63 = vpop.f32.mrf.mxu0  ;;  %v533_v0 = vpop.f32.mrf.mxu1  ;;  %v1911_v39 = vmul.f32 %v674_v33, %v571_v30  ;;  %v902_v33 = vmul.f32 %v1863_v45, %v1863_v45 }
 0x102   : > { %v1881_v1 = vmul.f32 %v643_v60, %v493_v63  ;;  %v1883_v2 = vmul.f32 %v659_v62, %v533_v0  ;;  %v663_v60 = vld [vmem:[#allocation8 + $0xd8] sm:$0xff]  ;;  %v606_v5 = vpop.f32.mrf.mxu3 }
 0x103   : > { %804 = vst [vmem:[#allocation2 + $0x20] sm:$0xff] %v1911_v39  ;;  %v1941_v30 = vmul.f32 %v688_v14, %v606_v5 }
 0x104   : > { %773 = vst [vmem:[#allocation2 + $0x48] sm:$0xff] %v1881_v1  ;;  %v904_v51 = vmul.f32 %v1881_v1, %v1881_v1 }
 0x105   : > { %789 = vst [vmem:[#allocation2 + $0x28] sm:$0xff] %v1883_v2 }
 0x106   : > { %818 = vst [vmem:[#allocation2 + $0x170] sm:$0xff] %v1941_v30 }
 0x108   : > { %v573_v50 = vpop.f32.mrf.mxu2 }
 0x109   : > { %v496_v12 = vpop.f32.mrf.mxu0  ;;  %v536_v13 = vpop.f32.mrf.mxu1  ;;  %v1921_v54 = vmul.f32 %v675_v44, %v573_v50  ;;  %v965_v44 = vadd.f32 %v1860_v40, %v902_v33 }
 0x10a   : > { %v1892_v15 = vmul.f32 %v644_v8, %v496_v12  ;;  %v1894_v16 = vmul.f32 %v660_v9, %v536_v13  ;;  %v664_v12 = vld [vmem:[#allocation8 + $0xe0] sm:$0xff] }
 0x10b   : > { %805 = vst [vmem:[#allocation2 + $0x128] sm:$0xff] %v1921_v54  ;;  %v676_v13 = vld [vmem:[#allocation8 + $0x140] sm:$0xff] }
 0x10c   : > { %774 = vst [vmem:[#allocation2 + $0x180] sm:$0xff] %v1892_v15  ;;  %v905_v40 = vmul.f32 %v1892_v15, %v1892_v15 }
 0x10d   : > { %790 = vst [vmem:[#allocation2 + $0x1e8] sm:$0xff] %v1894_v16 }
 0x110   : > { %v576_v4 = vpop.f32.mrf.mxu2 }
 0x111   : > { %v498_v25 = vpop.f32.mrf.mxu0  ;;  %v538_v26 = vpop.f32.mrf.mxu1  ;;  %v1939_v20 = vmul.f32 %v676_v13, %v576_v4 }
 0x112   : > { %v1905_v28 = vmul.f32 %v645_v23, %v498_v25  ;;  %v1907_v29 = vmul.f32 %v661_v24, %v538_v26  ;;  %v677_v24 = vld [vmem:[#allocation8 + $0x148] sm:$0xff]  ;;  %v608_v25 = vpop.f32.mrf.mxu3 }
 0x113   : > { %v689_v26 = vld [vmem:[#allocation8 + $0x1a8] sm:$0xff]  ;;  %806 = vst [vmem:[#allocation2 + $0x1a0] sm:$0xff] %v1939_v20 }
 0x114   : > { %775 = vst [vmem:[#allocation2 + $0x110] sm:$0xff] %v1905_v28  ;;  %v1949_v35 = vmul.f32 %v689_v26, %v608_v25  ;;  %v666_v25 = vld [vmem:[#allocation8 + $0xf0] sm:$0xff] }
 0x115   : > { %791 = vst [vmem:[#allocation2 + $0xf8] sm:$0xff] %v1907_v29  ;;  %v678_v26 = vld [vmem:[#allocation8 + $0x150] sm:$0xff] }
 0x116   : > { %819 = vst [vmem:[#allocation2 + $0x178] sm:$0xff] %v1949_v35 }
 0x118   : > { %v578_v23 = vpop.f32.mrf.mxu2 }
 0x119   : > { %v501_v42 = vpop.f32.mrf.mxu0  ;;  %v541_v43 = vpop.f32.mrf.mxu1  ;;  %v1944_v31 = vmul.f32 %v677_v24, %v578_v23 }
 0x11a   : > { %v1916_v47 = vmul.f32 %v646_v36, %v501_v42  ;;  %v1918_v48 = vmul.f32 %v662_v38, %v541_v43  ;;  %v835_v36 = vadd.f32 %v1857_v37, %v1863_v45  ;;  %v903_v38 = vmul.f32 %v1872_v56, %v1872_v56  ;;  %v649_v42 = vld [vmem:[#allocation8 + $0x68] sm:$0xff] }
 0x11b   : > { %v665_v43 = vld [vmem:[#allocation8 + $0xe8] sm:$0xff]  ;;  %807 = vst [vmem:[#allocation2 + $0x1f0] sm:$0xff] %v1944_v31 }
 0x11c   : > { %776 = vst [vmem:[#allocation2 + $0x118] sm:$0xff] %v1916_v47  ;;  %v836_v50 = vadd.f32 %v835_v36, %v1872_v56  ;;  %v907_v13 = vmul.f32 %v1916_v47, %v1916_v47 }
 0x11d   : > { %792 = vst [vmem:[#allocation2 + $0x160] sm:$0xff] %v1918_v48 }
 0x11e   : > { %v837_v4 = vadd.f32 %v836_v50, %v1881_v1  ;;  %v691_v50 = vld [vmem:[#allocation8 + $0x1b8] sm:$0xff] }
 0x120   : > { %v838_v5 = vadd.f32 %v837_v4, %v1892_v15  ;;  %v690_v15 = vld [vmem:[#allocation8 + $0x1b0] sm:$0xff] }
 0x121   : > { %v503_v62 = vpop.f32.mrf.mxu0  ;;  %v543_v63 = vpop.f32.mrf.mxu1 }
 0x122   : > { %v1929_v0 = vmul.f32 %v647_v58, %v503_v62  ;;  %v1931_v3 = vmul.f32 %v663_v60, %v543_v63  ;;  %v581_v60 = vpop.f32.mrf.mxu2  ;;  %v611_v62 = vpop.f32.mrf.mxu3  ;;  %v966_v63 = vadd.f32 %v965_v44, %v903_v38 }
 0x124   : > { %777 = vst [vmem:[#allocation2 + $0x98] sm:$0xff] %v1929_v0  ;;  %v967_v56 = vadd.f32 %v966_v63, %v904_v51  ;;  %v908_v33 = vmul.f32 %v1929_v0, %v1929_v0  ;;  %v1982_v51 = vmul.f32 %v690_v15, %v611_v62  ;;  %v651_v62 = vld [vmem:[#allocation8 + $0x78] sm:$0xff] }
 0x125   : > { %793 = vst [vmem:[#allocation2 + $0x30] sm:$0xff] %v1931_v3 }
 0x126   : > { %820 = vst [vmem:[#allocation2 + $0x68] sm:$0xff] %v1982_v51 }
 0x129   : > { %v506_v8 = vpop.f32.mrf.mxu0  ;;  %v546_v9 = vpop.f32.mrf.mxu1 }
 0x12a   : > { %v1935_v17 = vmul.f32 %v648_v6, %v506_v8  ;;  %v1937_v18 = vmul.f32 %v664_v12, %v546_v9  ;;  %v906_v6 = vmul.f32 %v1905_v28, %v1905_v28  ;;  %v968_v8 = vadd.f32 %v967_v56, %v905_v40  ;;  %v650_v12 = vld [vmem:[#allocation8 + $0x70] sm:$0xff]  ;;  %v613_v44 = vpop.f32.mrf.mxu3 }
 0x12b   : > { %v839_v9 = vadd.f32 %v838_v5, %v1905_v28  ;;  %v583_v28 = vpop.f32.mrf.mxu2  ;;  %v1990_v4 = vmul.f32 %v691_v50, %v613_v44  ;;  %v915_v50 = vmul.f32 %v1844_v7, %v1844_v7 }
 0x12c   : > { %778 = vst [vmem:[#allocation2 + $0x120] sm:$0xff] %v1935_v17  ;;  %v969_v1 = vadd.f32 %v968_v8, %v906_v6 }
 0x12d   : > { %794 = vst [vmem:[#allocation2 + $0x1e0] sm:$0xff] %v1937_v18  ;;  %v840_v14 = vadd.f32 %v839_v9, %v1916_v47 }
 0x12e   : > { %v970_v47 = vadd.f32 %v969_v1, %v907_v13  ;;  %821 = vst [vmem:[#allocation2 + $0x190] sm:$0xff] %v1990_v4 }
 0x131   : > { %v508_v53 = vpop.f32.mrf.mxu0  ;;  %v548_v58 = vpop.f32.mrf.mxu1 }
 0x132   : > { %v713_v37 = vmul.f32 %v649_v42, %v508_v53  ;;  %v1963_v45 = vmul.f32 %v665_v43, %v548_v58  ;;  %v1980_v42 = vmul.f32 %v678_v26, %v581_v60  ;;  %v679_v43 = vld [vmem:[#allocation8 + $0x158] sm:$0xff]  ;;  %v841_v53 = vadd.f32 %v840_v14, %v1929_v0 }
 0x133   : > { %v909_v58 = vmul.f32 %v1935_v17, %v1935_v17  ;;  %v1987_v63 = vmul.f32 %v679_v43, %v583_v28  ;;  %v971_v60 = vadd.f32 %v970_v47, %v908_v33  ;;  %v667_v0 = vld [vmem:[#allocation8 + $0xf8] sm:$0xff]  ;;  %v680_v47 = vld [vmem:[#allocation8 + $0x160] sm:$0xff] }
 0x134   : > { %779 = vst [vmem:[#allocation2 + $0x150] sm:$0xff] %v713_v37  ;;  %v842_v40 = vadd.f32 %v841_v53, %v1935_v17  ;;  %v910_v56 = vmul.f32 %v713_v37, %v713_v37  ;;  %v692_v53 = vld [vmem:[#allocation8 + $0x1c0] sm:$0xff] }
 0x135   : > { %795 = vst [vmem:[#allocation2] sm:$0xff] %v1963_v45  ;;  %v972_v5 = vadd.f32 %v971_v60, %v909_v58  ;;  %v681_v58 = vld [vmem:[#allocation8 + $0x168] sm:$0xff] }
 0x136   : > { %808 = vst [vmem:[#allocation2 + $0xe8] sm:$0xff] %v1980_v42  ;;  %v843_v6 = vadd.f32 %v842_v40, %v713_v37  ;;  %v913_v37 = vmul.f32 %v1838_v49, %v1838_v49 }
 0x137   : > { %809 = vst [vmem:[#allocation2 + $0x78] sm:$0xff] %v1987_v63  ;;  %v973_v13 = vadd.f32 %v972_v5, %v910_v56  ;;  %v693_v5 = vld [vmem:[#allocation8 + $0x1c8] sm:$0xff] }
 0x139   : > { %v511_v23 = vpop.f32.mrf.mxu0  ;;  %v551_v24 = vpop.f32.mrf.mxu1 }
 0x13a   : > { %v714_v36 = vmul.f32 %v650_v12, %v511_v23  ;;  %v1978_v38 = vmul.f32 %v666_v25, %v551_v24  ;;  %v586_v23 = vpop.f32.mrf.mxu2  ;;  %v616_v24 = vpop.f32.mrf.mxu3 }
 0x13b   : > { %v2009_v56 = vmul.f32 %v680_v47, %v586_v23  ;;  %v923_v47 = vmul.f32 %v1918_v48, %v1918_v48 }
 0x13c   : > { %780 = vst [vmem:[#allocation2 + $0x108] sm:$0xff] %v714_v36  ;;  %v911_v8 = vmul.f32 %v714_v36, %v714_v36  ;;  %v844_v1 = vadd.f32 %v843_v6, %v714_v36  ;;  %v914_v36 = vmul.f32 %v1841_v61, %v1841_v61 }
 0x13d   : > { %796 = vst [vmem:[#allocation2 + $0xf0] sm:$0xff] %v1978_v38 }
 0x13e   : > { %v974_v25 = vadd.f32 %v973_v13, %v911_v8  ;;  %v916_v8 = vmul.f32 %v1847_v19, %v1847_v19  ;;  %810 = vst [vmem:[#allocation2 + $0x70] sm:$0xff] %v2009_v56 }
 0x141   : > { %v513_v9 = vpop.f32.mrf.mxu0  ;;  %v553_v12 = vpop.f32.mrf.mxu1 }
 0x142   : > { %v715_v14 = vmul.f32 %v651_v62, %v513_v9  ;;  %v1997_v17 = vmul.f32 %v667_v0, %v553_v12  ;;  %v2011_v62 = vmul.f32 %v692_v53, %v616_v24  ;;  %v618_v0 = vpop.f32.mrf.mxu3  ;;  %v919_v24 = vmul.f32 %v1874_v57, %v1874_v57  ;;  %v682_v53 = vld [vmem:[#allocation8 + $0x170] sm:$0xff] }
 0x144   : > { %781 = vst [vmem:[#allocation2 + $0x60] sm:$0xff] %v715_v14  ;;  %v845_v26 = vadd.f32 %v844_v1, %v715_v14  ;;  %v912_v15 = vmul.f32 %v715_v14, %v715_v14  ;;  %v918_v14 = vmul.f32 %v1865_v46, %v1865_v46 }
 0x145   : > { %797 = vst [vmem:[#allocation2 + $0x8] sm:$0xff] %v1997_v17 }
 0x146   : > { %v846_v33 = vadd.f32 %v845_v26, %v1838_v49  ;;  %v975_v28 = vadd.f32 %v974_v25, %v912_v15  ;;  %v588_v49 = vpop.f32.mrf.mxu2  ;;  %822 = vst [vmem:[#allocation2 + $0x198] sm:$0xff] %v2011_v62 }
 0x147   : > { %v2013_v6 = vmul.f32 %v681_v58, %v588_v49  ;;  %v694_v58 = vld [vmem:[#allocation8 + $0x1d0] sm:$0xff] }
 0x148   : > { %v847_v43 = vadd.f32 %v846_v33, %v1841_v61  ;;  %v976_v44 = vadd.f32 %v975_v28, %v913_v37  ;;  %v2015_v61 = vmul.f32 %v693_v5, %v618_v0 }
 0x149   : > { %811 = vst [vmem:[#allocation2 + $0x90] sm:$0xff] %v2013_v6 }
 0x14a   : > { %v848_v60 = vadd.f32 %v847_v43, %v1844_v7  ;;  %v977_v40 = vadd.f32 %v976_v44, %v914_v36  ;;  %v917_v7 = vmul.f32 %v1853_v32, %v1853_v32  ;;  %823 = vst [vmem:[#allocation2 + $0x38] sm:$0xff] %v2015_v61  ;;  %v621_v37 = vpop.f32.mrf.mxu3  ;;  %v921_v36 = vmul.f32 %v1894_v16, %v1894_v16 }
 0x14b   : > { %v922_v44 = vmul.f32 %v1907_v29, %v1907_v29  ;;  %v2047_v0 = vmul.f32 %v694_v58, %v621_v37 }
 0x14c   : > { %v849_v9 = vadd.f32 %v848_v60, %v1847_v19  ;;  %v978_v12 = vadd.f32 %v977_v40, %v915_v50  ;;  %v683_v60 = vld [vmem:[#allocation8 + $0x178] sm:$0xff] }
 0x14d   : > { %824 = vst [vmem:[#allocation2 + $0xc0] sm:$0xff] %v2047_v0 }
 0x14e   : > { %v850_v13 = vadd.f32 %v849_v9, %v1853_v32  ;;  %v979_v1 = vadd.f32 %v978_v12, %v916_v8  ;;  %v591_v15 = vpop.f32.mrf.mxu2  ;;  %v920_v32 = vmul.f32 %v1883_v2, %v1883_v2  ;;  %v695_v8 = vld [vmem:[#allocation8 + $0x1d8] sm:$0xff]  ;;  %v924_v12 = vmul.f32 %v1931_v3, %v1931_v3 }
 0x14f   : > { %v2045_v49 = vmul.f32 %v682_v53, %v591_v15 }
 0x150   : > { %v851_v19 = vadd.f32 %v850_v13, %v1865_v46  ;;  %v980_v23 = vadd.f32 %v979_v1, %v917_v7  ;;  %v925_v1 = vmul.f32 %v1937_v18, %v1937_v18 }
 0x151   : > { %812 = vst [vmem:[#allocation2 + $0x1d8] sm:$0xff] %v2045_v49 }
 0x152   : > { %v981_v25 = vadd.f32 %v980_v23, %v918_v14  ;;  %v852_v26 = vadd.f32 %v851_v19, %v1874_v57  ;;  %v623_v5 = vpop.f32.mrf.mxu3 }
 0x154   : > { %v853_v33 = vadd.f32 %v852_v26, %v1883_v2  ;;  %v982_v28 = vadd.f32 %v981_v25, %v919_v24  ;;  %v927_v26 = vmul.f32 %v1978_v38, %v1978_v38 }
 0x156   : > { %v854_v46 = vadd.f32 %v853_v33, %v1894_v16  ;;  %v983_v43 = vadd.f32 %v982_v28, %v920_v32  ;;  %v593_v16 = vpop.f32.mrf.mxu2  ;;  %v928_v32 = vmul.f32 %v1997_v17, %v1997_v17  ;;  %v929_v33 = vmul.f32 %v1850_v27, %v1850_v27 }
 0x157   : > { %v2049_v9 = vmul.f32 %v683_v60, %v593_v16  ;;  %v934_v16 = vmul.f32 %v1897_v21, %v1897_v21 }
 0x158   : > { %v855_v50 = vadd.f32 %v854_v46, %v1907_v29  ;;  %v984_v57 = vadd.f32 %v983_v43, %v921_v36  ;;  %v2051_v29 = vmul.f32 %v695_v8, %v623_v5 }
 0x159   : > { %813 = vst [vmem:[#allocation2 + $0xd0] sm:$0xff] %v2049_v9 }
 0x15a   : > { %v856_v2 = vadd.f32 %v855_v50, %v1918_v48  ;;  %v985_v40 = vadd.f32 %v984_v57, %v922_v44  ;;  %825 = vst [vmem:[#allocation2 + $0x1c0] sm:$0xff] %v2051_v29  ;;  %v626_v15 = vpop.f32.mrf.mxu3  ;;  %v697_v44 = vld [vmem:[#allocation8 + $0x1e8] sm:$0xff]  ;;  %v931_v50 = vmul.f32 %v1869_v52, %v1869_v52 }
 0x15c   : > { %v857_v7 = vadd.f32 %v856_v2, %v1931_v3  ;;  %v986_v13 = vadd.f32 %v985_v40, %v923_v47  ;;  %v926_v3 = vmul.f32 %v1963_v45, %v1963_v45  ;;  %v933_v2 = vmul.f32 %v1887_v10, %v1887_v10 }
 0x15e   : > { %v858_v48 = vadd.f32 %v857_v7, %v1937_v18  ;;  %v987_v14 = vadd.f32 %v986_v13, %v924_v12 }
 0x160   : > { %v988_v19 = vadd.f32 %v987_v14, %v925_v1  ;;  %v859_v23 = vadd.f32 %v858_v48, %v1963_v45  ;;  %v930_v45 = vmul.f32 %v1855_v34, %v1855_v34  ;;  %v936_v48 = vmul.f32 %v1921_v54, %v1921_v54 }
 0x161   : > { %v937_v14 = vmul.f32 %v1939_v20, %v1939_v20 }
 0x162   : > { %v989_v24 = vadd.f32 %v988_v19, %v926_v3  ;;  %v860_v25 = vadd.f32 %v859_v23, %v1978_v38  ;;  %v696_v38 = vld [vmem:[#allocation8 + $0x1e0] sm:$0xff]  ;;  %v628_v53 = vpop.f32.mrf.mxu3 }
 0x163   : > { %v2081_v47 = vmul.f32 %v696_v38, %v626_v15  ;;  %v2083_v58 = vmul.f32 %v697_v44, %v628_v53  ;;  %v943_v44 = vmul.f32 %v2045_v49, %v2045_v49 }
 0x164   : > { %v990_v37 = vadd.f32 %v989_v24, %v927_v26  ;;  %v861_v18 = vadd.f32 %v860_v25, %v1997_v17  ;;  %v698_v24 = vld [vmem:[#allocation8 + $0x1f0] sm:$0xff]  ;;  %v699_v25 = vld [vmem:[#allocation8 + $0x1f8] sm:$0xff]  ;;  %v939_v26 = vmul.f32 %v1980_v42, %v1980_v42 }
 0x165   : > { %826 = vst [vmem:[#allocation2 + $0x158] sm:$0xff] %v2081_v47 }
 0x166   : > { %v862_v28 = vadd.f32 %v861_v18, %v1850_v27  ;;  %v991_v36 = vadd.f32 %v990_v37, %v928_v32  ;;  %v932_v27 = vmul.f32 %v1876_v59, %v1876_v59  ;;  %827 = vst [vmem:[#allocation2 + $0x10] sm:$0xff] %v2083_v58 }
 0x168   : > { %v863_v46 = vadd.f32 %v862_v28, %v1855_v34  ;;  %v992_v43 = vadd.f32 %v991_v36, %v929_v33  ;;  %v940_v33 = vmul.f32 %v1987_v63, %v1987_v63 }
 0x16a   : > { %v864_v57 = vadd.f32 %v863_v46, %v1869_v52  ;;  %v993_v17 = vadd.f32 %v992_v43, %v930_v45  ;;  %v631_v13 = vpop.f32.mrf.mxu3  ;;  %v942_v43 = vmul.f32 %v2013_v6, %v2013_v6 }
 0x16b   : > { %v2111_v37 = vmul.f32 %v698_v24, %v631_v13 }
 0x16c   : > { %v865_v60 = vadd.f32 %v864_v57, %v1876_v59  ;;  %v994_v34 = vadd.f32 %v993_v17, %v931_v50  ;;  %v935_v59 = vmul.f32 %v1911_v39, %v1911_v39  ;;  %v944_v17 = vmul.f32 %v2049_v9, %v2049_v9 }
 0x16d   : > { %828 = vst [vmem:[#allocation2 + $0x58] sm:$0xff] %v2111_v37 }
 0x16e   : > { %v866_v52 = vadd.f32 %v865_v60, %v1887_v10  ;;  %v995_v40 = vadd.f32 %v994_v34, %v932_v27 }
 0x170   : > { %v996_v5 = vadd.f32 %v995_v40, %v933_v2  ;;  %v867_v8 = vadd.f32 %v866_v52, %v1897_v21  ;;  %v938_v21 = vmul.f32 %v1944_v31, %v1944_v31 }
 0x172   : > { %v868_v12 = vadd.f32 %v867_v8, %v1911_v39  ;;  %v997_v7 = vadd.f32 %v996_v5, %v934_v16  ;;  %v633_v18 = vpop.f32.mrf.mxu3 }
 0x173   : > { %v2113_v32 = vmul.f32 %v699_v25, %v633_v18 }
 0x174   : > { %v869_v1 = vadd.f32 %v868_v12, %v1921_v54  ;;  %v998_v10 = vadd.f32 %v997_v7, %v935_v59 }
 0x175   : > { %829 = vst [vmem:[#allocation2 + $0xa0] sm:$0xff] %v2113_v32 }
 0x176   : > { %v870_v19 = vadd.f32 %v869_v1, %v1939_v20  ;;  %v999_v23 = vadd.f32 %v998_v10, %v936_v48 }
 0x178   : > { %v871_v3 = vadd.f32 %v870_v19, %v1944_v31  ;;  %v1000_v39 = vadd.f32 %v999_v23, %v937_v14 }
 0x17a   : > { %v872_v54 = vadd.f32 %v871_v3, %v1980_v42  ;;  %v1001_v15 = vadd.f32 %v1000_v39, %v938_v21  ;;  %v941_v42 = vmul.f32 %v2009_v56, %v2009_v56  ;;  %v956_v39 = vmul.f32 %v2051_v29, %v2051_v29 }
 0x17c   : > { %v873_v20 = vadd.f32 %v872_v54, %v1987_v63  ;;  %v1002_v31 = vadd.f32 %v1001_v15, %v939_v26  ;;  %v957_v26 = vmul.f32 %v2081_v47, %v2081_v47  ;;  %v958_v15 = vmul.f32 %v2083_v58, %v2083_v58 }
 0x17e   : > { %v1003_v28 = vadd.f32 %v1002_v31, %v940_v33  ;;  %v874_v36 = vadd.f32 %v873_v20, %v2009_v56  ;;  %v945_v56 = vmul.f32 %v1889_v11, %v1889_v11  ;;  %v959_v20 = vmul.f32 %v2111_v37, %v2111_v37 }
 0x17f   : > { %v960_v31 = vmul.f32 %v2113_v32, %v2113_v32 }
 0x180   : > { %v1004_v45 = vadd.f32 %v1003_v28, %v941_v42  ;;  %v875_v46 = vadd.f32 %v874_v36, %v2013_v6  ;;  %v946_v6 = vmul.f32 %v1899_v22, %v1899_v22 }
 0x182   : > { %v1005_v38 = vadd.f32 %v1004_v45, %v942_v43  ;;  %v876_v63 = vadd.f32 %v875_v46, %v2045_v49  ;;  %v947_v49 = vmul.f32 %v1913_v41, %v1913_v41 }
 0x184   : > { %v1006_v50 = vadd.f32 %v1005_v38, %v943_v44  ;;  %v877_v57 = vadd.f32 %v876_v63, %v2049_v9  ;;  %v948_v9 = vmul.f32 %v1923_v55, %v1923_v55 }
 0x186   : > { %v878_v53 = vadd.f32 %v877_v57, %v1889_v11  ;;  %v1007_v27 = vadd.f32 %v1006_v50, %v944_v17  ;;  %v949_v11 = vmul.f32 %v1941_v30, %v1941_v30 }
 0x188   : > { %v879_v60 = vadd.f32 %v878_v53, %v1899_v22  ;;  %v1008_v34 = vadd.f32 %v1007_v27, %v945_v56  ;;  %v950_v22 = vmul.f32 %v1949_v35, %v1949_v35 }
 0x18a   : > { %v880_v2 = vadd.f32 %v879_v60, %v1913_v41  ;;  %v1009_v52 = vadd.f32 %v1008_v34, %v946_v6  ;;  %v951_v41 = vmul.f32 %v1982_v51, %v1982_v51 }
 0x18c   : > { %v881_v40 = vadd.f32 %v880_v2, %v1923_v55  ;;  %v1010_v16 = vadd.f32 %v1009_v52, %v947_v49  ;;  %v952_v55 = vmul.f32 %v1990_v4, %v1990_v4 }
 0x18e   : > { %v882_v5 = vadd.f32 %v881_v40, %v1941_v30  ;;  %v1011_v8 = vadd.f32 %v1010_v16, %v948_v9  ;;  %v953_v30 = vmul.f32 %v2011_v62, %v2011_v62 }
 0x190   : > { %v1012_v59 = vadd.f32 %v1011_v8, %v949_v11  ;;  %v883_v12 = vadd.f32 %v882_v5, %v1949_v35  ;;  %v954_v35 = vmul.f32 %v2015_v61, %v2015_v61 }
 0x192   : > { %v884_v7 = vadd.f32 %v883_v12, %v1982_v51  ;;  %v1013_v13 = vadd.f32 %v1012_v59, %v950_v22  ;;  %v955_v51 = vmul.f32 %v2047_v0, %v2047_v0 }
 0x194   : > { %v885_v48 = vadd.f32 %v884_v7, %v1990_v4  ;;  %v1014_v1 = vadd.f32 %v1013_v13, %v951_v41 }
 0x196   : > { %v886_v10 = vadd.f32 %v885_v48, %v2011_v62  ;;  %v1015_v14 = vadd.f32 %v1014_v1, %v952_v55 }
 0x198   : > { %v887_v19 = vadd.f32 %v886_v10, %v2015_v61  ;;  %v1016_v23 = vadd.f32 %v1015_v14, %v953_v30 }
 0x19a   : > { %v888_v21 = vadd.f32 %v887_v19, %v2047_v0  ;;  %v1017_v3 = vadd.f32 %v1016_v23, %v954_v35 }
 0x19c   : > { %v889_v4 = vadd.f32 %v888_v21, %v2051_v29  ;;  %v1018_v24 = vadd.f32 %v1017_v3, %v955_v51 }
 0x19e   : > { %v1019_v62 = vadd.f32 %v1018_v24, %v956_v39  ;;  %v890_v25 = vadd.f32 %v889_v4, %v2081_v47 }
 0x1a0   : > { %v1020_v61 = vadd.f32 %v1019_v62, %v957_v26  ;;  %v891_v54 = vadd.f32 %v890_v25, %v2083_v58 }
 0x1a2   : > { %v1021_v0 = vadd.f32 %v1020_v61, %v958_v15  ;;  %v892_v18 = vadd.f32 %v891_v54, %v2111_v37 }
 0x1a4   : > { %v1022_v29 = vadd.f32 %v1021_v0, %v959_v20  ;;  %v893_v33 = vadd.f32 %v892_v18, %v2113_v32 }
 0x1a6   : > { %v1023_v28 = vadd.f32 %v1022_v29, %v960_v31  ;;  %895 = vst [vmem:[#allocation3] sm:$0xff] %v893_v33 }
 0x1a8   : > { %1025 = vst [vmem:[#allocation4] sm:$0xff] %v1023_v28 }
 0x1a9 PF: > { %p1475_p12 = scmp.ne.s32.totalorder %s1728_s18, 1 }
 0x1ab   : > { %1029 = sbr.rel (%p1475_p12) target bundleno = 547 (0x223), region = 64 }
 0x1b0   : > { %v1030_v47 = vld [vmem:[#allocation3] sm:$0xff]  ;;  %v1038_v58 = vld [vmem:[#allocation4] sm:$0xff]  ;;  %v1067_v22 = vld [vmem:[#allocation2 + $0xb0] sm:$0xff] }
 0x1b1   : > { %v1031_v36 = vrot.slane %v1030_v47, 4  ;;  %v1039_v42 = vrot.slane %v1038_v58, 4  ;;  %v1048_v40 = vld [vmem:[%s2342_s3] sm:$0x1]  ;;  %v1068_v59 = vld [vmem:[#allocation2 + $0x1b0] sm:$0xff]  ;;  %v1069_v12 = vld [vmem:[#allocation2 + $0xd8] sm:$0xff] }
 0x1b2   : > { %v1062_v8 = vld [vmem:[%s2343_s4] sm:$0x1]  ;;  %v1070_v13 = vld [vmem:[#allocation2 + $0x18] sm:$0xff]  ;;  %v1071_v55 = vld [vmem:[#allocation2 + $0x50] sm:$0xff] }
 0x1b3   : > { %v1032_v45 = vadd.f32 %v1031_v36, %v1030_v47  ;;  %v1040_v46 = vadd.f32 %v1039_v42, %v1038_v58  ;;  %v1072_v14 = vld [vmem:[#allocation2 + $0x168] sm:$0xff]  ;;  %v1073_v19 = vld [vmem:[#allocation2 + $0x130] sm:$0xff]  ;;  %v1075_v4 = vld [vmem:[#allocation2 + $0x180] sm:$0xff] }
 0x1b4   : > { %v1074_v21 = vld [vmem:[#allocation2 + $0x48] sm:$0xff]  ;;  %v1076_v26 = vld [vmem:[#allocation2 + $0x110] sm:$0xff]  ;;  %v1077_v15 = vld [vmem:[#allocation2 + $0x118] sm:$0xff] }
 0x1b5   : > { %v1033_v37 = vrot.slane %v1032_v45, 2  ;;  %v1041_v43 = vrot.slane %v1040_v46, 2  ;;  %v1078_v20 = vld [vmem:[#allocation2 + $0x98] sm:$0xff]  ;;  %v1079_v31 = vld [vmem:[#allocation2 + $0x120] sm:$0xff]  ;;  %v1080_v58 = vld [vmem:[#allocation2 + $0x150] sm:$0xff] }
 0x1b7   : > { %v1034_v38 = vadd.f32 %v1033_v37, %v1032_v45  ;;  %v1042_v63 = vadd.f32 %v1041_v43, %v1040_v46  ;;  %v1081_v45 = vld [vmem:[#allocation2 + $0x108] sm:$0xff]  ;;  %v1082_v43 = vld [vmem:[#allocation2 + $0x60] sm:$0xff] }
 0x1b9   : > { %v1035_v44 = vrot.slane %v1034_v38, 1  ;;  %v1043_v50 = vrot.slane %v1042_v63, 1 }
 0x1bb   : > { %v1036_v32 = vadd.f32 %v1035_v44, %v1034_v38  ;;  %v1044_v57 = vadd.f32 %v1043_v50, %v1042_v63  ;;  %v1083_v44 = vld [vmem:[#allocation2 + $0xe0] sm:$0xff] }
 0x1bd   : > { %v1037_v17 = vmul.f32 0.001953125, %v1036_v32  ;;  %v1045_v56 = vmul.f32 0.001953125, %v1044_v57  ;;  %v1084_v57 = vld [vmem:[#allocation2 + $0x188] sm:$0xff] }
 0x1bf   : > { %v1046_v53 = vmul.f32 %v1037_v17, %v1037_v17 }
 0x1c1   : > { %v1047_v27 = vsub.f32 %v1045_v56, %v1046_v53  ;;  %v1085_v53 = vld [vmem:[#allocation2 + $0x138] sm:$0xff] }
 0x1c3   : > { %v1049_v6 = vmax.f32 %v1047_v27, 0.0 }
 0x1c5   : > { %v1050_v60 = vadd.f32 1e-05, %v1049_v6 }
 0x1c7   : > { %1578 = vrsqrt.f32 %v1050_v60  ;;  %vm1057_vm0 = vweird.f32 %v1050_v60 }
 0x1cd   : > { %v1579_v34 = vpop.eup %1578 }
 0x1ce   : > { %v1052_v49 = vmul.f32 %v1579_v34, %v1050_v60  ;;  %vm1058_vm1 = vweird.f32 %v1579_v34  ;;  %v1086_v60 = vld [vmem:[#allocation2 + $0x140] sm:$0xff] }
 0x1cf   : > { %vm1059_vm2 = vmor %vm1057_vm0, %vm1058_vm1 }
 0x1d0   : > { %v1053_v2 = vmul.f32 %v1579_v34, %v1052_v49 }
 0x1d2   : > { %v1054_v52 = vmul.f32 0.5, %v1053_v2  ;;  %v1087_v2 = vld [vmem:[#allocation2 + $0x80] sm:$0xff] }
 0x1d4   : > { %v1055_v9 = vsub.f32 1.5, %v1054_v52 }
 0x1d6   : > { %v1056_v16 = vmul.f32 %v1579_v34, %v1055_v9 }
 0x1d8   : > { %v1060_v11 = vsel %vm1059_vm2, %v1579_v34, %v1056_v16 }
 0x1d9   : > { %v1061_v5 = vmul.f32 %v1060_v11, %v1048_v40  ;;  %v1088_v40 = vld [vmem:[#allocation2 + $0x1a8] sm:$0xff] }
 0x1db   : > { %v1063_v41 = vmul.f32 %v1061_v5, %v1037_v17  ;;  %v2187_v7 = vperm.slane %v1061_v5, 0  ;;  %v1089_v5 = vld [vmem:[#allocation2 + $0x1b8] sm:$0xff] }
 0x1dd   : > { %v1064_v48 = vsub.f32 %v1062_v8, %v1063_v41  ;;  %v1134_v1 = vmul.f32 %v2187_v7, %v1067_v22  ;;  %v1135_v30 = vmul.f32 %v2187_v7, %v1068_v59  ;;  %v1136_v10 = vmul.f32 %v2187_v7, %v1069_v12  ;;  %v1090_v59 = vld [vmem:[#allocation2 + $0x28] sm:$0xff] }
 0x1de   : > { %v1137_v35 = vmul.f32 %v2187_v7, %v1070_v13  ;;  %v1138_v51 = vmul.f32 %v2187_v7, %v1071_v55  ;;  %v1139_v3 = vmul.f32 %v2187_v7, %v1072_v14  ;;  %v1140_v25 = vmul.f32 %v2187_v7, %v1073_v19  ;;  %v1091_v13 = vld [vmem:[#allocation2 + $0x1e8] sm:$0xff]  ;;  %v1093_v14 = vld [vmem:[#allocation2 + $0x160] sm:$0xff] }
 0x1df   : > { %v2193_v23 = vperm.slane %v1064_v48, 0  ;;  %v1141_v54 = vmul.f32 %v2187_v7, %v1074_v21  ;;  %v1142_v18 = vmul.f32 %v2187_v7, %v1075_v4  ;;  %v1143_v33 = vmul.f32 %v2187_v7, %v1076_v26  ;;  %v1095_v4 = vld [vmem:[#allocation2 + $0x1e0] sm:$0xff] }
 0x1e0   : > { %v1144_v47 = vmul.f32 %v2187_v7, %v1077_v15  ;;  %v1145_v42 = vmul.f32 %v2187_v7, %v1078_v20  ;;  %v1146_v37 = vmul.f32 %v2187_v7, %v1079_v31  ;;  %v1147_v63 = vmul.f32 %v2187_v7, %v1080_v58 }
 0x1e1   : > { %v1201_v39 = vadd.f32 %v2193_v23, %v1134_v1  ;;  %v1202_v24 = vadd.f32 %v2193_v23, %v1135_v30  ;;  %v1203_v62 = vadd.f32 %v2193_v23, %v1136_v10  ;;  %v1204_v61 = vadd.f32 %v2193_v23, %v1137_v35  ;;  %v1092_v1 = vld [vmem:[#allocation2 + $0xf8] sm:$0xff] }
 0x1e2   : > { %v1205_v0 = vadd.f32 %v2193_v23, %v1138_v51  ;;  %v1206_v29 = vadd.f32 %v2193_v23, %v1139_v3  ;;  %v1207_v28 = vadd.f32 %v2193_v23, %v1140_v25  ;;  %v1208_v36 = vadd.f32 %v2193_v23, %v1141_v54  ;;  %v1094_v51 = vld [vmem:[#allocation2 + $0x30] sm:$0xff] }
 0x1e3   : > { %1265 = vst [vmem:[#allocation11] sm:$0xff] %v1201_v39  ;;  %v1209_v46 = vadd.f32 %v2193_v23, %v1142_v18  ;;  %v1210_v38 = vadd.f32 %v2193_v23, %v1143_v33  ;;  %v1211_v50 = vadd.f32 %v2193_v23, %v1144_v47  ;;  %v1148_v32 = vmul.f32 %v2187_v7, %v1081_v45 }
 0x1e4   : > { %1266 = vst [vmem:[#allocation11 + $0x8] sm:$0xff] %v1202_v24  ;;  %v1212_v17 = vadd.f32 %v2193_v23, %v1145_v42  ;;  %v1149_v56 = vmul.f32 %v2187_v7, %v1082_v43  ;;  %v1213_v27 = vadd.f32 %v2193_v23, %v1146_v37  ;;  %v1150_v6 = vmul.f32 %v2187_v7, %v1083_v44 }
 0x1e5   : > { %1267 = vst [vmem:[#allocation11 + $0x10] sm:$0xff] %v1203_v62  ;;  %v1214_v34 = vadd.f32 %v2193_v23, %v1147_v63  ;;  %v1151_v49 = vmul.f32 %v2187_v7, %v1084_v57  ;;  %v1215_v52 = vadd.f32 %v2193_v23, %v1148_v32  ;;  %v1152_v9 = vmul.f32 %v2187_v7, %v1085_v53  ;;  %v1096_v62 = vld [vmem:[#allocation2] sm:$0xff]  ;;  %v1104_v32 = vld [vmem:[#allocation2 + $0x1f8] sm:$0xff] }
 0x1e6   : > { %1268 = vst [vmem:[#allocation11 + $0x18] sm:$0xff] %v1204_v61  ;;  %v1216_v16 = vadd.f32 %v2193_v23, %v1149_v56  ;;  %v1153_v11 = vmul.f32 %v2187_v7, %v1086_v60  ;;  %v1217_v8 = vadd.f32 %v2193_v23, %v1150_v6  ;;  %v1154_v22 = vmul.f32 %v2187_v7, %v1087_v2  ;;  %v1097_v61 = vld [vmem:[#allocation2 + $0xf0] sm:$0xff]  ;;  %v1130_v63 = vld [vmem:[#allocation2 + $0xa0] sm:$0xff]  ;;  %v1106_v60 = vld [vmem:[#allocation2 + $0x128] sm:$0xff] }
 0x1e7   : > { %1269 = vst [vmem:[#allocation11 + $0x20] sm:$0xff] %v1205_v0  ;;  %v1218_v12 = vadd.f32 %v2193_v23, %v1151_v49  ;;  %v1155_v41 = vmul.f32 %v2187_v7, %v1088_v40  ;;  %v1219_v55 = vadd.f32 %v2193_v23, %v1152_v9  ;;  %v1156_v48 = vmul.f32 %v2187_v7, %v1089_v5  ;;  %v1098_v0 = vld [vmem:[#allocation2 + $0x8] sm:$0xff]  ;;  %v1105_v53 = vld [vmem:[#allocation2 + $0x20] sm:$0xff] }
 0x1e8   : > { %1270 = vst [vmem:[#allocation11 + $0x28] sm:$0xff] %v1206_v29  ;;  %v1220_v30 = vadd.f32 %v2193_v23, %v1153_v11  ;;  %v1157_v10 = vmul.f32 %v2187_v7, %v1090_v59  ;;  %v1221_v35 = vadd.f32 %v2193_v23, %v1154_v22  ;;  %v1158_v19 = vmul.f32 %v2187_v7, %v1091_v13  ;;  %v1099_v29 = vld [vmem:[#allocation2 + $0x148] sm:$0xff] }
 0x1e9   : > { %1271 = vst [vmem:[#allocation11 + $0x30] sm:$0xff] %v1207_v28  ;;  %v1222_v21 = vadd.f32 %v2193_v23, %v1155_v41  ;;  %v1159_v3 = vmul.f32 %v2187_v7, %v1092_v1  ;;  %v1223_v39 = vadd.f32 %v2193_v23, %v1156_v48  ;;  %v1160_v24 = vmul.f32 %v2187_v7, %v1093_v14  ;;  %v1100_v28 = vld [vmem:[#allocation2 + $0x1d0] sm:$0xff] }
 0x1ea   : > { %1272 = vst [vmem:[#allocation11 + $0x38] sm:$0xff] %v1208_v36  ;;  %v1224_v25 = vadd.f32 %v2193_v23, %v1157_v10  ;;  %v1161_v26 = vmul.f32 %v2187_v7, %v1094_v51  ;;  %v1225_v54 = vadd.f32 %v2193_v23, %v1158_v19  ;;  %v1162_v15 = vmul.f32 %v2187_v7, %v1095_v4  ;;  %v1101_v36 = vld [vmem:[#allocation2 + $0x100] sm:$0xff] }
 0x1eb   : > { %1273 = vst [vmem:[#allocation11 + $0x40] sm:$0xff] %v1209_v46  ;;  %v1226_v18 = vadd.f32 %v2193_v23, %v1159_v3  ;;  %v1163_v20 = vmul.f32 %v2187_v7, %v1096_v62  ;;  %v1227_v33 = vadd.f32 %v2193_v23, %v1160_v24  ;;  %v1164_v31 = vmul.f32 %v2187_v7, %v1097_v61  ;;  %v1102_v46 = vld [vmem:[#allocation2 + $0xc8] sm:$0xff] }
 0x1ec   : > { %1274 = vst [vmem:[#allocation11 + $0x48] sm:$0xff] %v1210_v38  ;;  %v1228_v47 = vadd.f32 %v2193_v23, %v1161_v26  ;;  %v1165_v58 = vmul.f32 %v2187_v7, %v1098_v0  ;;  %v1229_v42 = vadd.f32 %v2193_v23, %v1162_v15  ;;  %v1166_v45 = vmul.f32 %v2187_v7, %v1099_v29  ;;  %v1103_v38 = vld [vmem:[#allocation2 + $0x40] sm:$0xff] }
 0x1ed   : > { %1275 = vst [vmem:[#allocation11 + $0x50] sm:$0xff] %v1211_v50  ;;  %v1230_v37 = vadd.f32 %v2193_v23, %v1163_v20  ;;  %v1167_v43 = vmul.f32 %v2187_v7, %v1100_v28  ;;  %v1231_v44 = vadd.f32 %v2193_v23, %v1164_v31  ;;  %v1168_v50 = vmul.f32 %v2187_v7, %v1101_v36 }
 0x1ee   : > { %1276 = vst [vmem:[#allocation11 + $0x58] sm:$0xff] %v1212_v17  ;;  %v1197_v57 = vmul.f32 %v2187_v7, %v1130_v63  ;;  %v1232_v17 = vadd.f32 %v2193_v23, %v1165_v58  ;;  %v1169_v56 = vmul.f32 %v2187_v7, %v1102_v46  ;;  %v1170_v6 = vmul.f32 %v2187_v7, %v1103_v38  ;;  %v1123_v63 = vld [vmem:[#allocation2 + $0x198] sm:$0xff] }
 0x1ef   : > { %1277 = vst [vmem:[#allocation11 + $0x60] sm:$0xff] %v1213_v27  ;;  %v1233_v27 = vadd.f32 %v2193_v23, %v1166_v45  ;;  %v1234_v49 = vadd.f32 %v2193_v23, %v1167_v43  ;;  %v1171_v2 = vmul.f32 %v2187_v7, %v1104_v32  ;;  %v1235_v9 = vadd.f32 %v2193_v23, %v1168_v50  ;;  %v1124_v32 = vld [vmem:[#allocation2 + $0x38] sm:$0xff] }
 0x1f0   : > { %1278 = vst [vmem:[#allocation11 + $0x68] sm:$0xff] %v1214_v34  ;;  %v2263_v34 = vadd.f32 %v2193_v23, %v1197_v57  ;;  %v1172_v40 = vmul.f32 %v2187_v7, %v1105_v53  ;;  %v1236_v11 = vadd.f32 %v2193_v23, %v1169_v56  ;;  %v1173_v5 = vmul.f32 %v2187_v7, %v1106_v60  ;;  %v1125_v56 = vld [vmem:[#allocation2 + $0xc0] sm:$0xff] }
 0x1f1   : > { %1279 = vst [vmem:[#allocation11 + $0x70] sm:$0xff] %v1215_v52  ;;  %v1107_v52 = vld [vmem:[#allocation2 + $0x1a0] sm:$0xff]  ;;  %v1237_v22 = vadd.f32 %v2193_v23, %v1170_v6  ;;  %v1238_v41 = vadd.f32 %v2193_v23, %v1171_v2  ;;  %v1127_v2 = vld [vmem:[#allocation2 + $0x158] sm:$0xff] }
 0x1f2   : > { %1280 = vst [vmem:[#allocation11 + $0x78] sm:$0xff] %v1216_v16  ;;  %v1108_v16 = vld [vmem:[#allocation2 + $0x1f0] sm:$0xff]  ;;  %v1174_v59 = vmul.f32 %v2187_v7, %v1107_v52  ;;  %v1239_v48 = vadd.f32 %v2193_v23, %v1172_v40  ;;  %v1240_v10 = vadd.f32 %v2193_v23, %v1173_v5  ;;  %v1126_v6 = vld [vmem:[#allocation2 + $0x1c0] sm:$0xff]  ;;  %v1129_v5 = vld [vmem:[#allocation2 + $0x58] sm:$0xff] }
 0x1f3   : > { %1281 = vst [vmem:[#allocation11 + $0x80] sm:$0xff] %v1217_v8  ;;  %v1109_v8 = vld [vmem:[#allocation2 + $0xe8] sm:$0xff]  ;;  %v1175_v13 = vmul.f32 %v2187_v7, %v1108_v16  ;;  %v1128_v40 = vld [vmem:[#allocation2 + $0x10] sm:$0xff] }
 0x1f4   : > { %1282 = vst [vmem:[#allocation11 + $0x88] sm:$0xff] %v1218_v12  ;;  %v1110_v12 = vld [vmem:[#allocation2 + $0x78] sm:$0xff]  ;;  %v1176_v1 = vmul.f32 %v2187_v7, %v1109_v8  ;;  %v1241_v19 = vadd.f32 %v2193_v23, %v1174_v59 }
 0x1f5   : > { %1283 = vst [vmem:[#allocation11 + $0x90] sm:$0xff] %v1219_v55  ;;  %v1111_v55 = vld [vmem:[#allocation2 + $0x70] sm:$0xff]  ;;  %v1177_v14 = vmul.f32 %v2187_v7, %v1110_v12  ;;  %v1242_v3 = vadd.f32 %v2193_v23, %v1175_v13  ;;  %v1195_v12 = vmul.f32 %v2187_v7, %v1128_v40  ;;  %v1196_v13 = vmul.f32 %v2187_v7, %v1129_v5 }
 0x1f6   : > { %1284 = vst [vmem:[#allocation11 + $0x98] sm:$0xff] %v1220_v30  ;;  %v1112_v30 = vld [vmem:[#allocation2 + $0x90] sm:$0xff]  ;;  %v1178_v51 = vmul.f32 %v2187_v7, %v1111_v55  ;;  %v1243_v24 = vadd.f32 %v2193_v23, %v1176_v1 }
 0x1f7   : > { %1285 = vst [vmem:[#allocation11 + $0xa0] sm:$0xff] %v1221_v35  ;;  %v1113_v35 = vld [vmem:[#allocation2 + $0x1d8] sm:$0xff]  ;;  %v1179_v4 = vmul.f32 %v2187_v7, %v1112_v30  ;;  %v1244_v26 = vadd.f32 %v2193_v23, %v1177_v14  ;;  %v1262_v1 = vadd.f32 %v2193_v23, %v1195_v12  ;;  %v1263_v30 = vadd.f32 %v2193_v23, %v1196_v13 }
 0x1f8   : > { %1286 = vst [vmem:[#allocation11 + $0xa8] sm:$0xff] %v1222_v21  ;;  %v1114_v21 = vld [vmem:[#allocation2 + $0xd0] sm:$0xff]  ;;  %v1180_v62 = vmul.f32 %v2187_v7, %v1113_v35  ;;  %v1245_v15 = vadd.f32 %v2193_v23, %v1178_v51 }
 0x1f9   : > { %1287 = vst [vmem:[#allocation11 + $0xb0] sm:$0xff] %v1223_v39  ;;  %v1115_v39 = vld [vmem:[#allocation2 + $0xb8] sm:$0xff]  ;;  %v1181_v61 = vmul.f32 %v2187_v7, %v1114_v21  ;;  %v1246_v20 = vadd.f32 %v2193_v23, %v1179_v4 }
 0x1fa   : > { %1288 = vst [vmem:[#allocation11 + $0xb8] sm:$0xff] %v1224_v25  ;;  %v1116_v25 = vld [vmem:[#allocation2 + $0x88] sm:$0xff]  ;;  %v1182_v0 = vmul.f32 %v2187_v7, %v1115_v39  ;;  %v1247_v31 = vadd.f32 %v2193_v23, %v1180_v62 }
 0x1fb   : > { %1289 = vst [vmem:[#allocation11 + $0xc0] sm:$0xff] %v1225_v54  ;;  %v1117_v54 = vld [vmem:[#allocation2 + $0xa8] sm:$0xff]  ;;  %v1183_v29 = vmul.f32 %v2187_v7, %v1116_v25  ;;  %v1248_v58 = vadd.f32 %v2193_v23, %v1181_v61 }
 0x1fc   : > { %1290 = vst [vmem:[#allocation11 + $0xc8] sm:$0xff] %v1226_v18  ;;  %v1118_v18 = vld [vmem:[#allocation2 + $0x1c8] sm:$0xff]  ;;  %v1184_v28 = vmul.f32 %v2187_v7, %v1117_v54  ;;  %v1249_v45 = vadd.f32 %v2193_v23, %v1182_v0 }
 0x1fd   : > { %1291 = vst [vmem:[#allocation11 + $0xd0] sm:$0xff] %v1227_v33  ;;  %v1119_v33 = vld [vmem:[#allocation2 + $0x170] sm:$0xff]  ;;  %v1185_v36 = vmul.f32 %v2187_v7, %v1118_v18  ;;  %v1250_v43 = vadd.f32 %v2193_v23, %v1183_v29 }
 0x1fe   : > { %1292 = vst [vmem:[#allocation11 + $0xd8] sm:$0xff] %v1228_v47  ;;  %v1120_v47 = vld [vmem:[#allocation2 + $0x178] sm:$0xff]  ;;  %v1186_v46 = vmul.f32 %v2187_v7, %v1119_v33 }
 0x1ff   : > { %1293 = vst [vmem:[#allocation11 + $0xe0] sm:$0xff] %v1229_v42  ;;  %v1121_v42 = vld [vmem:[#allocation2 + $0x68] sm:$0xff]  ;;  %v1187_v38 = vmul.f32 %v2187_v7, %v1120_v47  ;;  %v1252_v57 = vadd.f32 %v2193_v23, %v1185_v36 }
 0x200   : > { %1294 = vst [vmem:[#allocation11 + $0xe8] sm:$0xff] %v1230_v37  ;;  %v1122_v37 = vld [vmem:[#allocation2 + $0x190] sm:$0xff]  ;;  %v1188_v50 = vmul.f32 %v2187_v7, %v1121_v42  ;;  %v1253_v53 = vadd.f32 %v2193_v23, %v1186_v46 }
 0x201   : > { %1295 = vst [vmem:[#allocation11 + $0xf0] sm:$0xff] %v1231_v44  ;;  %v1251_v44 = vadd.f32 %v2193_v23, %v1184_v28  ;;  %v1254_v60 = vadd.f32 %v2193_v23, %v1187_v38 }
 0x202   : > { %1296 = vst [vmem:[#allocation11 + $0xf8] sm:$0xff] %v1232_v17  ;;  %v1189_v17 = vmul.f32 %v2187_v7, %v1122_v37  ;;  %v1255_v52 = vadd.f32 %v2193_v23, %v1188_v50 }
 0x203   : > { %1297 = vst [vmem:[#allocation11 + $0x100] sm:$0xff] %v1233_v27  ;;  %v1190_v27 = vmul.f32 %v2187_v7, %v1123_v63 }
 0x204   : > { %1298 = vst [vmem:[#allocation11 + $0x108] sm:$0xff] %v1234_v49  ;;  %v1191_v49 = vmul.f32 %v2187_v7, %v1124_v32  ;;  %v1256_v16 = vadd.f32 %v2193_v23, %v1189_v17 }
 0x205   : > { %1299 = vst [vmem:[#allocation11 + $0x110] sm:$0xff] %v1235_v9  ;;  %v1192_v9 = vmul.f32 %v2187_v7, %v1125_v56  ;;  %v1257_v8 = vadd.f32 %v2193_v23, %v1190_v27 }
 0x206   : > { %1300 = vst [vmem:[#allocation11 + $0x118] sm:$0xff] %v1236_v11  ;;  %v1193_v11 = vmul.f32 %v2187_v7, %v1126_v6  ;;  %v1258_v59 = vadd.f32 %v2193_v23, %v1191_v49 }
 0x207   : > { %1301 = vst [vmem:[#allocation11 + $0x120] sm:$0xff] %v1237_v22  ;;  %v1194_v22 = vmul.f32 %v2187_v7, %v1127_v2 }
 0x208   : > { %1302 = vst [vmem:[#allocation11 + $0x128] sm:$0xff] %v1238_v41  ;;  %v1259_v41 = vadd.f32 %v2193_v23, %v1192_v9  ;;  %v1260_v55 = vadd.f32 %v2193_v23, %v1193_v11 }
 0x209   : > { %1303 = vst [vmem:[#allocation11 + $0x130] sm:$0xff] %v1239_v48  ;;  %v1261_v48 = vadd.f32 %v2193_v23, %v1194_v22 }
 0x20a   : > { %1304 = vst [vmem:[#allocation11 + $0x138] sm:$0xff] %v1240_v10 }
 0x20b   : > { %1305 = vst [vmem:[#allocation11 + $0x140] sm:$0xff] %v1241_v19 }
 0x20c   : > { %1306 = vst [vmem:[#allocation11 + $0x148] sm:$0xff] %v1242_v3 }
 0x20d   : > { %1307 = vst [vmem:[#allocation11 + $0x150] sm:$0xff] %v1243_v24 }
 0x20e   : > { %1308 = vst [vmem:[#allocation11 + $0x158] sm:$0xff] %v1244_v26 }
 0x20f   : > { %1309 = vst [vmem:[#allocation11 + $0x160] sm:$0xff] %v1245_v15 }
 0x210   : > { %1310 = vst [vmem:[#allocation11 + $0x168] sm:$0xff] %v1246_v20 }
 0x211   : > { %1311 = vst [vmem:[#allocation11 + $0x170] sm:$0xff] %v1247_v31 }
 0x212   : > { %1312 = vst [vmem:[#allocation11 + $0x178] sm:$0xff] %v1248_v58 }
 0x213   : > { %1313 = vst [vmem:[#allocation11 + $0x180] sm:$0xff] %v1249_v45 }
 0x214   : > { %1314 = vst [vmem:[#allocation11 + $0x188] sm:$0xff] %v1250_v43 }
 0x215   : > { %1315 = vst [vmem:[#allocation11 + $0x190] sm:$0xff] %v1251_v44 }
 0x216   : > { %1316 = vst [vmem:[#allocation11 + $0x198] sm:$0xff] %v1252_v57 }
 0x217   : > { %1317 = vst [vmem:[#allocation11 + $0x1a0] sm:$0xff] %v1253_v53 }
 0x218   : > { %1318 = vst [vmem:[#allocation11 + $0x1a8] sm:$0xff] %v1254_v60 }
 0x219   : > { %1319 = vst [vmem:[#allocation11 + $0x1b0] sm:$0xff] %v1255_v52 }
 0x21a   : > { %1320 = vst [vmem:[#allocation11 + $0x1b8] sm:$0xff] %v1256_v16 }
 0x21b   : > { %1321 = vst [vmem:[#allocation11 + $0x1c0] sm:$0xff] %v1257_v8 }
 0x21c   : > { %1322 = vst [vmem:[#allocation11 + $0x1c8] sm:$0xff] %v1258_v59 }
 0x21d   : > { %1323 = vst [vmem:[#allocation11 + $0x1d0] sm:$0xff] %v1259_v41 }
 0x21e   : > { %1324 = vst [vmem:[#allocation11 + $0x1d8] sm:$0xff] %v1260_v55 }
 0x21f   : > { %1325 = vst [vmem:[#allocation11 + $0x1e0] sm:$0xff] %v1261_v48 }
 0x220   : > { %1326 = vst [vmem:[#allocation11 + $0x1e8] sm:$0xff] %v1262_v1 }
 0x221   : > { %1327 = vst [vmem:[#allocation11 + $0x1f0] sm:$0xff] %v1263_v30 }
 0x222   : > { %1328 = vst [vmem:[#allocation11 + $0x1f8] sm:$0xff] %v2263_v34 }
 0x223 PF: > { %p1542_p13 = scmp.eq.s32.totalorder %s1792_s21, 1  ;;  %s1345_s7 = sshll.u32 %s2344_s5, 4  ;;  %s1346_s7 = int_to_ptr.hbm [resolvable:$true] %s1345_s7 }
 0x224   : > { %s1743_s8 = smov [#allocation11]   ;;  %s1744_s10 = smov 128  }
 0x225   : > { %s1343_s9 = sshll.u32 %s1743_s8, 4  ;;  %s1745_s11 = smov 8   ;;  %s1344_s9 = int_to_ptr.vmem [resolvable:$true] %s1343_s9 }
 0x226   : > { %1517 = dma.vmem_to_hbm [thread:$0]  (%p1542_p13), %s1344_s9, 8192, %s1346_s7, [#allocation7], %s1744_s10, %s1744_s10, %s1745_s11  }
 0x227 PF: > { %p1544_p0 = scmp.eq.s32.totalorder %s1464_s22, 1 }
 0x229   : > { %p1532_p1 = pnand %p1544_p0, %p1467_p7 }
 0x22b   : > { %p1533_p2 = pneg %p1532_p1 }
 0x22d   : > { %1723 = dma.done.wait (%p1533_p2), [#allocation7], 8192  }
 0x22e   : > { %1725 = vsyncadd (%p1533_p2), [#allocation7], 4294959104  ;;  %s24_s20 = sadd.s32 1, %s1736_s20   ;;  %s2346_s18 = smov %s1732_s19 }
 0x22f   : > { %p21_p3 = scmp.ge.s32.totalorder %s24_s20, 4   ;;  %s2347_s19 = smov %s2349_s23 }
 0x231   :  { %23 = sbr.rel (!%p21_p3) target bundleno = 7 (0x7), region = 116 }
 0x236   :  { %1367 = vsyncpa [#allocation6], 1 }
 0x237   :  { %1369 = vsyncpa [#allocation6 + $0x1], 1 }
 0x238   :  { %1370 = vsyncpa [#allocation9], 1 }
 0x239   :  { %1372 = vsyncpa [#allocation9 + $0x1], 1 }
 0x23a   :  { %1373 = vsyncpa [#allocation7], 1 }
 0x23b   :  { %1375 = vsyncpa [#allocation7 + $0x1], 1 }

</bundles_post_ra>
